<compile_context>
chip_gen: v7x
topology: tpu7x:2x2x1
jax: 0.10.0
libtpu: 0.0.40
codegen_flags: <defaults>
</compile_context>

<pallas_src>
import math

import jax
import jax.numpy as jnp
from jax import lax
from jax.experimental import pallas as pl
from jax.experimental.pallas import tpu as pltpu

# --------------------- small MusicBERT / RoBERTa-like config ---------------------
VOCAB = 100          # toy octuple-token vocab
HIDDEN = 32
HEADS = 2
HEAD_DIM = HIDDEN // HEADS
LAYERS = 2
INTERMEDIATE = 64
MAX_POS = 32
PAD_IDX = 1
LN_EPS = 1e-5

BATCH = 2
SEQ = 8
assert SEQ + PAD_IDX < MAX_POS, "position ids would index past the position table"


# ------------------------------- fused Pallas kernel -------------------------------
def _ln(x, g, b):
    """LayerNorm over the last axis (f32 math on the VPU/XLU)."""
    mean = jnp.mean(x, axis=-1, keepdims=True)
    cen = x - mean
    var = jnp.mean(cen * cen, axis=-1, keepdims=True)
    return cen * lax.rsqrt(var + LN_EPS) * g + b


def _encoder_kernel(emb_ref, bias_ref, emb_g_ref, emb_b_ref,
                    wqkv_ref, bqkv_ref, wo_ref, bo_ref,
                    ln1_g_ref, ln1_b_ref,
                    w1_ref, b1_ref, w2_ref, b2_ref,
                    ln2_g_ref, ln2_b_ref,
                    o_ref):
    """Whole MusicBERT encoder forward on one (B*S, D) slab resident in VMEM."""
    f32 = jnp.float32
    bf16 = jnp.bfloat16
    scale = 1.0 / math.sqrt(HEAD_DIM)

    def matmul(x_f32, w_bf16, b_f32):
        # bf16 MXU inputs, f32 accumulation; bias add in f32 on the VPU.
        return jnp.dot(x_f32.astype(bf16), w_bf16, preferred_element_type=f32) + b_f32

    # Embedding LayerNorm (plain LN, no fake zeros-residual stream).
    h = _ln(emb_ref[...], emb_g_ref[...], emb_b_ref[...])        # (BS, D) f32
    bias = bias_ref[...]                                         # (BS, BS) additive mask

    for l in range(LAYERS):        # static unroll; all layer weights stay in VMEM
        # ------------------------------ self-attention ------------------------------
        qkv = matmul(h, wqkv_ref[l], bqkv_ref[l])                # (BS, 3D), fused QKV
        q = qkv[:, 0 * HIDDEN:1 * HIDDEN]
        k = qkv[:, 1 * HIDDEN:2 * HIDDEN]
        v = qkv[:, 2 * HIDDEN:3 * HIDDEN]

        ctx_heads = []
        for hh in range(HEADS):    # static unroll over heads
            lo, hi = hh * HEAD_DIM, (hh + 1) * HEAD_DIM
            qh = q[:, lo:hi].astype(bf16)
            kh = k[:, lo:hi].astype(bf16)
            vh = v[:, lo:hi].astype(bf16)
            # q @ k^T via dot_general contracting the head dim (no materialized k.T).
            s = lax.dot_general(qh, kh, (((1,), (1,)), ((), ())),
                                preferred_element_type=f32) * scale
            s = s + bias                                         # block-diag + pad mask
            s = s - jnp.max(s, axis=-1, keepdims=True)
            p = jnp.exp(s)
            p = p * pl.reciprocal(jnp.sum(p, axis=-1, keepdims=True), approx=True)
            ctx_heads.append(jnp.dot(p.astype(bf16), vh, preferred_element_type=f32))
        ctx = jnp.concatenate(ctx_heads, axis=-1)                # (BS, D)

        attn_out = matmul(ctx, wo_ref[l], bo_ref[l])
        h = _ln(attn_out + h, ln1_g_ref[l], ln1_b_ref[l])

        # -------------------------------- feed-forward --------------------------------
        inter = matmul(h, w1_ref[l], b1_ref[l])                  # (BS, I)
        # TODO(synk): HF/fairseq RoBERTa uses exact (erf) GELU; tanh approximation here.
        inter = jax.nn.gelu(inter, approximate=True)
        ffn = matmul(inter, w2_ref[l], b2_ref[l])
        h = _ln(ffn + h, ln2_g_ref[l], ln2_b_ref[l])

    o_ref[...] = h


def _full_spec(shape):
    n = len(shape)
    return pl.BlockSpec(shape, lambda i, _n=n: (0,) * _n)


def encoder_fused(emb, bias, p):
    """Single pallas_call running the whole encoder; hidden state stays VMEM-resident."""
    BS, D = emb.shape
    args = (emb, bias,
            p["emb_ln_g"], p["emb_ln_b"],
            p["wqkv"], p["bqkv"], p["wo"], p["bo"],
            p["ln1_g"], p["ln1_b"],
            p["w1"], p["b1"], p["w2"], p["b2"],
            p["ln2_g"], p["ln2_b"])
    return pl.pallas_call(
        _encoder_kernel,
        out_shape=jax.ShapeDtypeStruct((BS, D), jnp.float32),
        grid=(1,),
        in_specs=[_full_spec(a.shape) for a in args],
        out_specs=pl.BlockSpec((BS, D), lambda i: (0, 0)),
        compiler_params=pltpu.CompilerParams(
            # single grid point -> no megacore sharding (per v7x feedback)
            dimension_semantics=("arbitrary",)),
    )(*args)


# --------------------------------- parameter creation ---------------------------------
def init_params(key):
    def normal(k, shape, std=0.02):
        return std * jax.random.normal(k, shape, dtype=jnp.float32)

    keys = jax.random.split(key, 3 + LAYERS)
    params = {
        "word_emb": normal(keys[0], (VOCAB, HIDDEN)),
        "pos_emb": normal(keys[1], (MAX_POS, HIDDEN)),
        "type_emb": normal(keys[2], (1, HIDDEN)),
        "emb_ln_g": jnp.ones((HIDDEN,), jnp.float32),
        "emb_ln_b": jnp.zeros((HIDDEN,), jnp.float32),
        "layers": [],
    }
    for l in range(LAYERS):
        k = jax.random.split(keys[3 + l], 6)
        params["layers"].append({
            "wq": normal(k[0], (HIDDEN, HIDDEN)), "bq": jnp.zeros((HIDDEN,), jnp.float32),
            "wk": normal(k[1], (HIDDEN, HIDDEN)), "bk": jnp.zeros((HIDDEN,), jnp.float32),
            "wv": normal(k[2], (HIDDEN, HIDDEN)), "bv": jnp.zeros((HIDDEN,), jnp.float32),
            "wo": normal(k[3], (HIDDEN, HIDDEN)), "bo": jnp.zeros((HIDDEN,), jnp.float32),
            "ln1_g": jnp.ones((HIDDEN,), jnp.float32), "ln1_b": jnp.zeros((HIDDEN,), jnp.float32),
            "w1": normal(k[4], (HIDDEN, INTERMEDIATE)), "b1": jnp.zeros((INTERMEDIATE,), jnp.float32),
            "w2": normal(k[5], (INTERMEDIATE, HIDDEN)), "b2": jnp.zeros((HIDDEN,), jnp.float32),
            "ln2_g": jnp.ones((HIDDEN,), jnp.float32), "ln2_b": jnp.zeros((HIDDEN,), jnp.float32),
        })
    return params


def pack_params(params):
    """Stack per-layer weights with a leading LAYERS dim, fuse wq|wk|wv into (D, 3D),
    and cast matmul weights to bf16 (half the weight DMA bytes, bf16 MXU path).
    Biases and LayerNorm params stay f32 (elementwise path stays f32, v5e-safe)."""
    bf16 = jnp.bfloat16
    L = params["layers"]
    return {
        "word_emb": params["word_emb"],
        "pos_emb": params["pos_emb"],
        "type_emb": params["type_emb"],
        "emb_ln_g": params["emb_ln_g"].reshape(1, HIDDEN),
        "emb_ln_b": params["emb_ln_b"].reshape(1, HIDDEN),
        "wqkv": jnp.stack([jnp.concatenate([lp["wq"], lp["wk"], lp["wv"]], axis=1)
                           for lp in L]).astype(bf16),                       # (L, D, 3D)
        "bqkv": jnp.stack([jnp.concatenate([lp["bq"], lp["bk"], lp["bv"]])[None, :]
                           for lp in L]),                                    # (L, 1, 3D)
        "wo": jnp.stack([lp["wo"] for lp in L]).astype(bf16),                # (L, D, D)
        "bo": jnp.stack([lp["bo"][None, :] for lp in L]),                    # (L, 1, D)
        "ln1_g": jnp.stack([lp["ln1_g"][None, :] for lp in L]),
        "ln1_b": jnp.stack([lp["ln1_b"][None, :] for lp in L]),
        "w1": jnp.stack([lp["w1"] for lp in L]).astype(bf16),                # (L, D, I)
        "b1": jnp.stack([lp["b1"][None, :] for lp in L]),                    # (L, 1, I)
        "w2": jnp.stack([lp["w2"] for lp in L]).astype(bf16),                # (L, I, D)
        "b2": jnp.stack([lp["b2"][None, :] for lp in L]),                    # (L, 1, D)
        "ln2_g": jnp.stack([lp["ln2_g"][None, :] for lp in L]),
        "ln2_b": jnp.stack([lp["ln2_b"][None, :] for lp in L]),
    }


# -------------------------------------- forward --------------------------------------
def music_encoder_forward(packed, oct_tokens):
    """MusicEncoder.forward: musicbert.extract_features(oct) -> (B, S, D) hidden states."""
    B, S = oct_tokens.shape
    BS = B * S
    attention_mask = (oct_tokens != PAD_IDX).astype(jnp.int32)    # pad-derived mask
    mask_f = attention_mask.astype(jnp.float32)

    # RoBERTa position ids: cumsum over non-pad positions, offset by padding_idx.
    positions = (jnp.cumsum(attention_mask, axis=1) * attention_mask
                 + PAD_IDX).astype(jnp.int32)

    # Embedding gathers stay in plain JAX (no clean Pallas gather at this size).
    emb = (jnp.take(packed["word_emb"], oct_tokens, axis=0)
           + jnp.take(packed["pos_emb"], positions, axis=0)
           + packed["type_emb"][0][None, None, :])                # (B, S, D)
    emb = emb.reshape(BS, HIDDEN)

    # Additive attention mask on the flat (B*S, B*S) score slab:
    # block-diagonal (no cross-batch attention) AND key must be non-pad.
    batch_ids = jnp.repeat(jnp.arange(B, dtype=jnp.int32), S)
    same_batch = (batch_ids[:, None] == batch_ids[None, :]).astype(jnp.float32)
    allowed = same_batch * mask_f.reshape(BS)[None, :]
    bias = (1.0 - allowed) * -1e9                                 # (BS, BS) f32

    h = encoder_fused(emb, bias, packed)                          # (BS, D) f32
    # hidden_states[-1], detached (pure fn — no grads flow anyway).
    return h.reshape(B, S, HIDDEN)


if __name__ == "__main__":
    key = jax.random.PRNGKey(0)
    pkey, dkey = jax.random.split(key)
    packed = pack_params(init_params(pkey))

    # toy octuple-token batch (ids >= 2, so nothing is the pad token)
    oct_tokens = jax.random.randint(dkey, (BATCH, SEQ), 2, VOCAB, dtype=jnp.int32)

    fwd = jax.jit(music_encoder_forward)
    out = jax.block_until_ready(fwd(packed, oct_tokens))

    assert out.shape == (BATCH, SEQ, HIDDEN)
    assert out.dtype == jnp.float32
    assert bool(jnp.all(jnp.isfinite(out)))
    print("KERNEL_OK")
</pallas_src>

<mosaic_0001>
module attributes {stable_mosaic.version = 11 : i64} {
  func.func @_encoder_kernel(%arg0: i32, %arg1: memref<16x32xf32, #tpu.memory_space<vmem>>, %arg2: memref<16x16xf32, #tpu.memory_space<vmem>>, %arg3: memref<1x32xf32, #tpu.memory_space<vmem>>, %arg4: memref<1x32xf32, #tpu.memory_space<vmem>>, %arg5: memref<2x32x96xbf16, #tpu.memory_space<vmem>>, %arg6: memref<2x1x96xf32, #tpu.memory_space<vmem>>, %arg7: memref<2x32x32xbf16, #tpu.memory_space<vmem>>, %arg8: memref<2x1x32xf32, #tpu.memory_space<vmem>>, %arg9: memref<2x1x32xf32, #tpu.memory_space<vmem>>, %arg10: memref<2x1x32xf32, #tpu.memory_space<vmem>>, %arg11: memref<2x32x64xbf16, #tpu.memory_space<vmem>>, %arg12: memref<2x1x64xf32, #tpu.memory_space<vmem>>, %arg13: memref<2x64x32xbf16, #tpu.memory_space<vmem>>, %arg14: memref<2x1x32xf32, #tpu.memory_space<vmem>>, %arg15: memref<2x1x32xf32, #tpu.memory_space<vmem>>, %arg16: memref<2x1x32xf32, #tpu.memory_space<vmem>>, %arg17: memref<16x32xf32, #tpu.memory_space<vmem>>) attributes {dimension_semantics = [#tpu.dimension_semantics<arbitrary>], iteration_bounds = array<i64: 1>, scalar_prefetch = 0 : i64, scratch_operands = 0 : i64, tpu.core_type = #tpu.core_type<tc>, window_params = [{pipeline_mode = #tpu.pipeline_mode<synchronous>, transform_indices = @transform_0, window_bounds = array<i64: 16, 32>}, {pipeline_mode = #tpu.pipeline_mode<synchronous>, transform_indices = @transform_1, window_bounds = array<i64: 16, 16>}, {pipeline_mode = #tpu.pipeline_mode<synchronous>, transform_indices = @transform_2, window_bounds = array<i64: 1, 32>}, {pipeline_mode = #tpu.pipeline_mode<synchronous>, transform_indices = @transform_3, window_bounds = array<i64: 1, 32>}, {pipeline_mode = #tpu.pipeline_mode<synchronous>, transform_indices = @transform_4, window_bounds = array<i64: 2, 32, 96>}, {pipeline_mode = #tpu.pipeline_mode<synchronous>, transform_indices = @transform_5, window_bounds = array<i64: 2, 1, 96>}, {pipeline_mode = #tpu.pipeline_mode<synchronous>, transform_indices = @transform_6, window_bounds = array<i64: 2, 32, 32>}, {pipeline_mode = #tpu.pipeline_mode<synchronous>, transform_indices = @transform_7, window_bounds = array<i64: 2, 1, 32>}, {pipeline_mode = #tpu.pipeline_mode<synchronous>, transform_indices = @transform_8, window_bounds = array<i64: 2, 1, 32>}, {pipeline_mode = #tpu.pipeline_mode<synchronous>, transform_indices = @transform_9, window_bounds = array<i64: 2, 1, 32>}, {pipeline_mode = #tpu.pipeline_mode<synchronous>, transform_indices = @transform_10, window_bounds = array<i64: 2, 32, 64>}, {pipeline_mode = #tpu.pipeline_mode<synchronous>, transform_indices = @transform_11, window_bounds = array<i64: 2, 1, 64>}, {pipeline_mode = #tpu.pipeline_mode<synchronous>, transform_indices = @transform_12, window_bounds = array<i64: 2, 64, 32>}, {pipeline_mode = #tpu.pipeline_mode<synchronous>, transform_indices = @transform_13, window_bounds = array<i64: 2, 1, 32>}, {pipeline_mode = #tpu.pipeline_mode<synchronous>, transform_indices = @transform_14, window_bounds = array<i64: 2, 1, 32>}, {pipeline_mode = #tpu.pipeline_mode<synchronous>, transform_indices = @transform_15, window_bounds = array<i64: 2, 1, 32>}, {pipeline_mode = #tpu.pipeline_mode<synchronous>, transform_indices = @transform_16, window_bounds = array<i64: 16, 32>}]} {
    %c0 = arith.constant 0 : index
    %c0_0 = arith.constant 0 : index
    %0 = vector.load %arg1[%c0, %c0_0] : memref<16x32xf32, #tpu.memory_space<vmem>>, vector<16x32xf32>
    %c0_1 = arith.constant 0 : index
    %c0_2 = arith.constant 0 : index
    %1 = vector.load %arg3[%c0_1, %c0_2] : memref<1x32xf32, #tpu.memory_space<vmem>>, vector<1x32xf32>
    %c0_3 = arith.constant 0 : index
    %c0_4 = arith.constant 0 : index
    %2 = vector.load %arg4[%c0_3, %c0_4] : memref<1x32xf32, #tpu.memory_space<vmem>>, vector<1x32xf32>
    %cst = arith.constant dense<0.000000e+00> : vector<16xf32>
    %3 = vector.multi_reduction <add>, %0, %cst [1] : vector<16x32xf32> to vector<16xf32>
    %4 = vector.shape_cast %3 : vector<16xf32> to vector<16x1xf32>
    %cst_5 = arith.constant 3.200000e+01 : f32
    %5 = vector.broadcast %cst_5 : f32 to vector<16x1xf32>
    %6 = arith.divf %4, %5 : vector<16x1xf32>
    %7 = vector.broadcast %6 : vector<16x1xf32> to vector<16x32xf32>
    %8 = arith.subf %0, %7 : vector<16x32xf32>
    %9 = arith.mulf %8, %8 : vector<16x32xf32>
    %cst_6 = arith.constant dense<0.000000e+00> : vector<16xf32>
    %10 = vector.multi_reduction <add>, %9, %cst_6 [1] : vector<16x32xf32> to vector<16xf32>
    %11 = vector.shape_cast %10 : vector<16xf32> to vector<16x1xf32>
    %cst_7 = arith.constant 3.200000e+01 : f32
    %12 = vector.broadcast %cst_7 : f32 to vector<16x1xf32>
    %13 = arith.divf %11, %12 : vector<16x1xf32>
    %cst_8 = arith.constant 9.99999974E-6 : f32
    %14 = vector.broadcast %cst_8 : f32 to vector<16x1xf32>
    %15 = arith.addf %13, %14 : vector<16x1xf32>
    %16 = math.rsqrt %15 : vector<16x1xf32>
    %17 = vector.broadcast %16 : vector<16x1xf32> to vector<16x32xf32>
    %18 = arith.mulf %8, %17 : vector<16x32xf32>
    %19 = vector.broadcast %1 : vector<1x32xf32> to vector<16x32xf32>
    %20 = arith.mulf %18, %19 : vector<16x32xf32>
    %21 = vector.broadcast %2 : vector<1x32xf32> to vector<16x32xf32>
    %22 = arith.addf %20, %21 : vector<16x32xf32>
    %c0_9 = arith.constant 0 : index
    %c0_10 = arith.constant 0 : index
    %23 = vector.load %arg2[%c0_9, %c0_10] : memref<16x16xf32, #tpu.memory_space<vmem>>, vector<16x16xf32>
    %c0_11 = arith.constant 0 : index
    %c0_12 = arith.constant 0 : index
    %c0_13 = arith.constant 0 : index
    %24 = vector.load %arg5[%c0_11, %c0_12, %c0_13] : memref<2x32x96xbf16, #tpu.memory_space<vmem>>, vector<1x32x96xbf16>
    %25 = vector.shape_cast %24 : vector<1x32x96xbf16> to vector<32x96xbf16>
    %c0_14 = arith.constant 0 : index
    %c0_15 = arith.constant 0 : index
    %c0_16 = arith.constant 0 : index
    %26 = vector.load %arg6[%c0_14, %c0_15, %c0_16] : memref<2x1x96xf32, #tpu.memory_space<vmem>>, vector<1x1x96xf32>
    %27 = vector.shape_cast %26 : vector<1x1x96xf32> to vector<1x96xf32>
    %28 = arith.truncf %22 : vector<16x32xf32> to vector<16x32xbf16>
    %cst_17 = arith.constant dense<0.000000e+00> : vector<16x96xf32>
    %29 = tpu.matmul %28, %25, %cst_17 {dimension_numbers = #tpu.dot_dimension_numbers<[1], [0], [0], [1], [0, 0, 1, 1], [], []>} : vector<16x32xbf16>, vector<32x96xbf16>, vector<16x96xf32> -> vector<16x96xf32>
    %30 = vector.broadcast %27 : vector<1x96xf32> to vector<16x96xf32>
    %31 = arith.addf %29, %30 : vector<16x96xf32>
    %32 = vector.extract_strided_slice %31 {offsets = [0, 0], sizes = [16, 32], strides = [1, 1]} : vector<16x96xf32> to vector<16x32xf32>
    %33 = vector.extract_strided_slice %31 {offsets = [0, 32], sizes = [16, 32], strides = [1, 1]} : vector<16x96xf32> to vector<16x32xf32>
    %34 = vector.extract_strided_slice %31 {offsets = [0, 64], sizes = [16, 32], strides = [1, 1]} : vector<16x96xf32> to vector<16x32xf32>
    %35 = vector.extract_strided_slice %32 {offsets = [0, 0], sizes = [16, 16], strides = [1, 1]} : vector<16x32xf32> to vector<16x16xf32>
    %36 = arith.truncf %35 : vector<16x16xf32> to vector<16x16xbf16>
    %37 = vector.extract_strided_slice %33 {offsets = [0, 0], sizes = [16, 16], strides = [1, 1]} : vector<16x32xf32> to vector<16x16xf32>
    %38 = arith.truncf %37 : vector<16x16xf32> to vector<16x16xbf16>
    %39 = vector.extract_strided_slice %34 {offsets = [0, 0], sizes = [16, 16], strides = [1, 1]} : vector<16x32xf32> to vector<16x16xf32>
    %40 = arith.truncf %39 : vector<16x16xf32> to vector<16x16xbf16>
    %cst_18 = arith.constant dense<0.000000e+00> : vector<16x16xf32>
    %41 = tpu.matmul %36, %38, %cst_18 {dimension_numbers = #tpu.dot_dimension_numbers<[1], [1], [0], [0], [0, 0, 1, 0], [], []>} : vector<16x16xbf16>, vector<16x16xbf16>, vector<16x16xf32> -> vector<16x16xf32>
    %cst_19 = arith.constant 2.500000e-01 : f32
    %42 = vector.broadcast %cst_19 : f32 to vector<16x16xf32>
    %43 = arith.mulf %41, %42 : vector<16x16xf32>
    %44 = arith.addf %43, %23 : vector<16x16xf32>
    %cst_20 = arith.constant dense<0xFF800000> : vector<16xf32>
    %45 = vector.multi_reduction <maximumf>, %44, %cst_20 [1] : vector<16x16xf32> to vector<16xf32>
    %46 = vector.shape_cast %45 : vector<16xf32> to vector<16x1xf32>
    %47 = vector.broadcast %46 : vector<16x1xf32> to vector<16x16xf32>
    %48 = arith.subf %44, %47 : vector<16x16xf32>
    %49 = math.exp %48 : vector<16x16xf32>
    %cst_21 = arith.constant dense<0.000000e+00> : vector<16xf32>
    %50 = vector.multi_reduction <add>, %49, %cst_21 [1] : vector<16x16xf32> to vector<16xf32>
    %51 = vector.shape_cast %50 : vector<16xf32> to vector<16x1xf32>
    %52 = tpu.reciprocal %51 {approx = true} : vector<16x1xf32> -> vector<16x1xf32>
    %53 = vector.broadcast %52 : vector<16x1xf32> to vector<16x16xf32>
    %54 = arith.mulf %49, %53 : vector<16x16xf32>
    %55 = arith.truncf %54 : vector<16x16xf32> to vector<16x16xbf16>
    %cst_22 = arith.constant dense<0.000000e+00> : vector<16x16xf32>
    %56 = tpu.matmul %55, %40, %cst_22 {dimension_numbers = #tpu.dot_dimension_numbers<[1], [0], [0], [1], [0, 0, 1, 1], [], []>} : vector<16x16xbf16>, vector<16x16xbf16>, vector<16x16xf32> -> vector<16x16xf32>
    %57 = vector.extract_strided_slice %32 {offsets = [0, 16], sizes = [16, 16], strides = [1, 1]} : vector<16x32xf32> to vector<16x16xf32>
    %58 = arith.truncf %57 : vector<16x16xf32> to vector<16x16xbf16>
    %59 = vector.extract_strided_slice %33 {offsets = [0, 16], sizes = [16, 16], strides = [1, 1]} : vector<16x32xf32> to vector<16x16xf32>
    %60 = arith.truncf %59 : vector<16x16xf32> to vector<16x16xbf16>
    %61 = vector.extract_strided_slice %34 {offsets = [0, 16], sizes = [16, 16], strides = [1, 1]} : vector<16x32xf32> to vector<16x16xf32>
    %62 = arith.truncf %61 : vector<16x16xf32> to vector<16x16xbf16>
    %cst_23 = arith.constant dense<0.000000e+00> : vector<16x16xf32>
    %63 = tpu.matmul %58, %60, %cst_23 {dimension_numbers = #tpu.dot_dimension_numbers<[1], [1], [0], [0], [0, 0, 1, 0], [], []>} : vector<16x16xbf16>, vector<16x16xbf16>, vector<16x16xf32> -> vector<16x16xf32>
    %cst_24 = arith.constant 2.500000e-01 : f32
    %64 = vector.broadcast %cst_24 : f32 to vector<16x16xf32>
    %65 = arith.mulf %63, %64 : vector<16x16xf32>
    %66 = arith.addf %65, %23 : vector<16x16xf32>
    %cst_25 = arith.constant dense<0xFF800000> : vector<16xf32>
    %67 = vector.multi_reduction <maximumf>, %66, %cst_25 [1] : vector<16x16xf32> to vector<16xf32>
    %68 = vector.shape_cast %67 : vector<16xf32> to vector<16x1xf32>
    %69 = vector.broadcast %68 : vector<16x1xf32> to vector<16x16xf32>
    %70 = arith.subf %66, %69 : vector<16x16xf32>
    %71 = math.exp %70 : vector<16x16xf32>
    %cst_26 = arith.constant dense<0.000000e+00> : vector<16xf32>
    %72 = vector.multi_reduction <add>, %71, %cst_26 [1] : vector<16x16xf32> to vector<16xf32>
    %73 = vector.shape_cast %72 : vector<16xf32> to vector<16x1xf32>
    %74 = tpu.reciprocal %73 {approx = true} : vector<16x1xf32> -> vector<16x1xf32>
    %75 = vector.broadcast %74 : vector<16x1xf32> to vector<16x16xf32>
    %76 = arith.mulf %71, %75 : vector<16x16xf32>
    %77 = arith.truncf %76 : vector<16x16xf32> to vector<16x16xbf16>
    %cst_27 = arith.constant dense<0.000000e+00> : vector<16x16xf32>
    %78 = tpu.matmul %77, %62, %cst_27 {dimension_numbers = #tpu.dot_dimension_numbers<[1], [0], [0], [1], [0, 0, 1, 1], [], []>} : vector<16x16xbf16>, vector<16x16xbf16>, vector<16x16xf32> -> vector<16x16xf32>
    %79 = tpu.concatenate %56, %78 in 1 : vector<16x16xf32>, vector<16x16xf32> -> vector<16x32xf32>
    %c0_28 = arith.constant 0 : index
    %c0_29 = arith.constant 0 : index
    %c0_30 = arith.constant 0 : index
    %80 = vector.load %arg7[%c0_28, %c0_29, %c0_30] : memref<2x32x32xbf16, #tpu.memory_space<vmem>>, vector<1x32x32xbf16>
    %81 = vector.shape_cast %80 : vector<1x32x32xbf16> to vector<32x32xbf16>
    %c0_31 = arith.constant 0 : index
    %c0_32 = arith.constant 0 : index
    %c0_33 = arith.constant 0 : index
    %82 = vector.load %arg8[%c0_31, %c0_32, %c0_33] : memref<2x1x32xf32, #tpu.memory_space<vmem>>, vector<1x1x32xf32>
    %83 = vector.shape_cast %82 : vector<1x1x32xf32> to vector<1x32xf32>
    %84 = arith.truncf %79 : vector<16x32xf32> to vector<16x32xbf16>
    %cst_34 = arith.constant dense<0.000000e+00> : vector<16x32xf32>
    %85 = tpu.matmul %84, %81, %cst_34 {dimension_numbers = #tpu.dot_dimension_numbers<[1], [0], [0], [1], [0, 0, 1, 1], [], []>} : vector<16x32xbf16>, vector<32x32xbf16>, vector<16x32xf32> -> vector<16x32xf32>
    %86 = vector.broadcast %83 : vector<1x32xf32> to vector<16x32xf32>
    %87 = arith.addf %85, %86 : vector<16x32xf32>
    %88 = arith.addf %87, %22 : vector<16x32xf32>
    %c0_35 = arith.constant 0 : index
    %c0_36 = arith.constant 0 : index
    %c0_37 = arith.constant 0 : index
    %89 = vector.load %arg9[%c0_35, %c0_36, %c0_37] : memref<2x1x32xf32, #tpu.memory_space<vmem>>, vector<1x1x32xf32>
    %90 = vector.shape_cast %89 : vector<1x1x32xf32> to vector<1x32xf32>
    %c0_38 = arith.constant 0 : index
    %c0_39 = arith.constant 0 : index
    %c0_40 = arith.constant 0 : index
    %91 = vector.load %arg10[%c0_38, %c0_39, %c0_40] : memref<2x1x32xf32, #tpu.memory_space<vmem>>, vector<1x1x32xf32>
    %92 = vector.shape_cast %91 : vector<1x1x32xf32> to vector<1x32xf32>
    %cst_41 = arith.constant dense<0.000000e+00> : vector<16xf32>
    %93 = vector.multi_reduction <add>, %88, %cst_41 [1] : vector<16x32xf32> to vector<16xf32>
    %94 = vector.shape_cast %93 : vector<16xf32> to vector<16x1xf32>
    %cst_42 = arith.constant 3.200000e+01 : f32
    %95 = vector.broadcast %cst_42 : f32 to vector<16x1xf32>
    %96 = arith.divf %94, %95 : vector<16x1xf32>
    %97 = vector.broadcast %96 : vector<16x1xf32> to vector<16x32xf32>
    %98 = arith.subf %88, %97 : vector<16x32xf32>
    %99 = arith.mulf %98, %98 : vector<16x32xf32>
    %cst_43 = arith.constant dense<0.000000e+00> : vector<16xf32>
    %100 = vector.multi_reduction <add>, %99, %cst_43 [1] : vector<16x32xf32> to vector<16xf32>
    %101 = vector.shape_cast %100 : vector<16xf32> to vector<16x1xf32>
    %cst_44 = arith.constant 3.200000e+01 : f32
    %102 = vector.broadcast %cst_44 : f32 to vector<16x1xf32>
    %103 = arith.divf %101, %102 : vector<16x1xf32>
    %cst_45 = arith.constant 9.99999974E-6 : f32
    %104 = vector.broadcast %cst_45 : f32 to vector<16x1xf32>
    %105 = arith.addf %103, %104 : vector<16x1xf32>
    %106 = math.rsqrt %105 : vector<16x1xf32>
    %107 = vector.broadcast %106 : vector<16x1xf32> to vector<16x32xf32>
    %108 = arith.mulf %98, %107 : vector<16x32xf32>
    %109 = vector.broadcast %90 : vector<1x32xf32> to vector<16x32xf32>
    %110 = arith.mulf %108, %109 : vector<16x32xf32>
    %111 = vector.broadcast %92 : vector<1x32xf32> to vector<16x32xf32>
    %112 = arith.addf %110, %111 : vector<16x32xf32>
    %c0_46 = arith.constant 0 : index
    %c0_47 = arith.constant 0 : index
    %c0_48 = arith.constant 0 : index
    %113 = vector.load %arg11[%c0_46, %c0_47, %c0_48] : memref<2x32x64xbf16, #tpu.memory_space<vmem>>, vector<1x32x64xbf16>
    %114 = vector.shape_cast %113 : vector<1x32x64xbf16> to vector<32x64xbf16>
    %c0_49 = arith.constant 0 : index
    %c0_50 = arith.constant 0 : index
    %c0_51 = arith.constant 0 : index
    %115 = vector.load %arg12[%c0_49, %c0_50, %c0_51] : memref<2x1x64xf32, #tpu.memory_space<vmem>>, vector<1x1x64xf32>
    %116 = vector.shape_cast %115 : vector<1x1x64xf32> to vector<1x64xf32>
    %117 = arith.truncf %112 : vector<16x32xf32> to vector<16x32xbf16>
    %cst_52 = arith.constant dense<0.000000e+00> : vector<16x64xf32>
    %118 = tpu.matmul %117, %114, %cst_52 {dimension_numbers = #tpu.dot_dimension_numbers<[1], [0], [0], [1], [0, 0, 1, 1], [], []>} : vector<16x32xbf16>, vector<32x64xbf16>, vector<16x64xf32> -> vector<16x64xf32>
    %119 = vector.broadcast %116 : vector<1x64xf32> to vector<16x64xf32>
    %120 = arith.addf %118, %119 : vector<16x64xf32>
    %121 = arith.mulf %120, %120 : vector<16x64xf32>
    %122 = arith.mulf %120, %121 : vector<16x64xf32>
    %cst_53 = arith.constant 4.471500e-02 : f32
    %123 = vector.broadcast %cst_53 : f32 to vector<16x64xf32>
    %124 = arith.mulf %123, %122 : vector<16x64xf32>
    %125 = arith.addf %120, %124 : vector<16x64xf32>
    %cst_54 = arith.constant 0.797884583 : f32
    %126 = vector.broadcast %cst_54 : f32 to vector<16x64xf32>
    %127 = arith.mulf %126, %125 : vector<16x64xf32>
    %128 = math.tanh %127 : vector<16x64xf32>
    %cst_55 = arith.constant 1.000000e+00 : f32
    %129 = vector.broadcast %cst_55 : f32 to vector<16x64xf32>
    %130 = arith.addf %129, %128 : vector<16x64xf32>
    %cst_56 = arith.constant 5.000000e-01 : f32
    %131 = vector.broadcast %cst_56 : f32 to vector<16x64xf32>
    %132 = arith.mulf %131, %130 : vector<16x64xf32>
    %133 = arith.mulf %120, %132 : vector<16x64xf32>
    %c0_57 = arith.constant 0 : index
    %c0_58 = arith.constant 0 : index
    %c0_59 = arith.constant 0 : index
    %134 = vector.load %arg13[%c0_57, %c0_58, %c0_59] : memref<2x64x32xbf16, #tpu.memory_space<vmem>>, vector<1x64x32xbf16>
    %135 = vector.shape_cast %134 : vector<1x64x32xbf16> to vector<64x32xbf16>
    %c0_60 = arith.constant 0 : index
    %c0_61 = arith.constant 0 : index
    %c0_62 = arith.constant 0 : index
    %136 = vector.load %arg14[%c0_60, %c0_61, %c0_62] : memref<2x1x32xf32, #tpu.memory_space<vmem>>, vector<1x1x32xf32>
    %137 = vector.shape_cast %136 : vector<1x1x32xf32> to vector<1x32xf32>
    %138 = arith.truncf %133 : vector<16x64xf32> to vector<16x64xbf16>
    %cst_63 = arith.constant dense<0.000000e+00> : vector<16x32xf32>
    %139 = tpu.matmul %138, %135, %cst_63 {dimension_numbers = #tpu.dot_dimension_numbers<[1], [0], [0], [1], [0, 0, 1, 1], [], []>} : vector<16x64xbf16>, vector<64x32xbf16>, vector<16x32xf32> -> vector<16x32xf32>
    %140 = vector.broadcast %137 : vector<1x32xf32> to vector<16x32xf32>
    %141 = arith.addf %139, %140 : vector<16x32xf32>
    %142 = arith.addf %141, %112 : vector<16x32xf32>
    %c0_64 = arith.constant 0 : index
    %c0_65 = arith.constant 0 : index
    %c0_66 = arith.constant 0 : index
    %143 = vector.load %arg15[%c0_64, %c0_65, %c0_66] : memref<2x1x32xf32, #tpu.memory_space<vmem>>, vector<1x1x32xf32>
    %144 = vector.shape_cast %143 : vector<1x1x32xf32> to vector<1x32xf32>
    %c0_67 = arith.constant 0 : index
    %c0_68 = arith.constant 0 : index
    %c0_69 = arith.constant 0 : index
    %145 = vector.load %arg16[%c0_67, %c0_68, %c0_69] : memref<2x1x32xf32, #tpu.memory_space<vmem>>, vector<1x1x32xf32>
    %146 = vector.shape_cast %145 : vector<1x1x32xf32> to vector<1x32xf32>
    %cst_70 = arith.constant dense<0.000000e+00> : vector<16xf32>
    %147 = vector.multi_reduction <add>, %142, %cst_70 [1] : vector<16x32xf32> to vector<16xf32>
    %148 = vector.shape_cast %147 : vector<16xf32> to vector<16x1xf32>
    %cst_71 = arith.constant 3.200000e+01 : f32
    %149 = vector.broadcast %cst_71 : f32 to vector<16x1xf32>
    %150 = arith.divf %148, %149 : vector<16x1xf32>
    %151 = vector.broadcast %150 : vector<16x1xf32> to vector<16x32xf32>
    %152 = arith.subf %142, %151 : vector<16x32xf32>
    %153 = arith.mulf %152, %152 : vector<16x32xf32>
    %cst_72 = arith.constant dense<0.000000e+00> : vector<16xf32>
    %154 = vector.multi_reduction <add>, %153, %cst_72 [1] : vector<16x32xf32> to vector<16xf32>
    %155 = vector.shape_cast %154 : vector<16xf32> to vector<16x1xf32>
    %cst_73 = arith.constant 3.200000e+01 : f32
    %156 = vector.broadcast %cst_73 : f32 to vector<16x1xf32>
    %157 = arith.divf %155, %156 : vector<16x1xf32>
    %cst_74 = arith.constant 9.99999974E-6 : f32
    %158 = vector.broadcast %cst_74 : f32 to vector<16x1xf32>
    %159 = arith.addf %157, %158 : vector<16x1xf32>
    %160 = math.rsqrt %159 : vector<16x1xf32>
    %161 = vector.broadcast %160 : vector<16x1xf32> to vector<16x32xf32>
    %162 = arith.mulf %152, %161 : vector<16x32xf32>
    %163 = vector.broadcast %144 : vector<1x32xf32> to vector<16x32xf32>
    %164 = arith.mulf %162, %163 : vector<16x32xf32>
    %165 = vector.broadcast %146 : vector<1x32xf32> to vector<16x32xf32>
    %166 = arith.addf %164, %165 : vector<16x32xf32>
    %c1 = arith.constant 1 : index
    %c0_75 = arith.constant 0 : index
    %c0_76 = arith.constant 0 : index
    %167 = vector.load %arg5[%c1, %c0_75, %c0_76] : memref<2x32x96xbf16, #tpu.memory_space<vmem>>, vector<1x32x96xbf16>
    %168 = vector.shape_cast %167 : vector<1x32x96xbf16> to vector<32x96xbf16>
    %c1_77 = arith.constant 1 : index
    %c0_78 = arith.constant 0 : index
    %c0_79 = arith.constant 0 : index
    %169 = vector.load %arg6[%c1_77, %c0_78, %c0_79] : memref<2x1x96xf32, #tpu.memory_space<vmem>>, vector<1x1x96xf32>
    %170 = vector.shape_cast %169 : vector<1x1x96xf32> to vector<1x96xf32>
    %171 = arith.truncf %166 : vector<16x32xf32> to vector<16x32xbf16>
    %cst_80 = arith.constant dense<0.000000e+00> : vector<16x96xf32>
    %172 = tpu.matmul %171, %168, %cst_80 {dimension_numbers = #tpu.dot_dimension_numbers<[1], [0], [0], [1], [0, 0, 1, 1], [], []>} : vector<16x32xbf16>, vector<32x96xbf16>, vector<16x96xf32> -> vector<16x96xf32>
    %173 = vector.broadcast %170 : vector<1x96xf32> to vector<16x96xf32>
    %174 = arith.addf %172, %173 : vector<16x96xf32>
    %175 = vector.extract_strided_slice %174 {offsets = [0, 0], sizes = [16, 32], strides = [1, 1]} : vector<16x96xf32> to vector<16x32xf32>
    %176 = vector.extract_strided_slice %174 {offsets = [0, 32], sizes = [16, 32], strides = [1, 1]} : vector<16x96xf32> to vector<16x32xf32>
    %177 = vector.extract_strided_slice %174 {offsets = [0, 64], sizes = [16, 32], strides = [1, 1]} : vector<16x96xf32> to vector<16x32xf32>
    %178 = vector.extract_strided_slice %175 {offsets = [0, 0], sizes = [16, 16], strides = [1, 1]} : vector<16x32xf32> to vector<16x16xf32>
    %179 = arith.truncf %178 : vector<16x16xf32> to vector<16x16xbf16>
    %180 = vector.extract_strided_slice %176 {offsets = [0, 0], sizes = [16, 16], strides = [1, 1]} : vector<16x32xf32> to vector<16x16xf32>
    %181 = arith.truncf %180 : vector<16x16xf32> to vector<16x16xbf16>
    %182 = vector.extract_strided_slice %177 {offsets = [0, 0], sizes = [16, 16], strides = [1, 1]} : vector<16x32xf32> to vector<16x16xf32>
    %183 = arith.truncf %182 : vector<16x16xf32> to vector<16x16xbf16>
    %cst_81 = arith.constant dense<0.000000e+00> : vector<16x16xf32>
    %184 = tpu.matmul %179, %181, %cst_81 {dimension_numbers = #tpu.dot_dimension_numbers<[1], [1], [0], [0], [0, 0, 1, 0], [], []>} : vector<16x16xbf16>, vector<16x16xbf16>, vector<16x16xf32> -> vector<16x16xf32>
    %cst_82 = arith.constant 2.500000e-01 : f32
    %185 = vector.broadcast %cst_82 : f32 to vector<16x16xf32>
    %186 = arith.mulf %184, %185 : vector<16x16xf32>
    %187 = arith.addf %186, %23 : vector<16x16xf32>
    %cst_83 = arith.constant dense<0xFF800000> : vector<16xf32>
    %188 = vector.multi_reduction <maximumf>, %187, %cst_83 [1] : vector<16x16xf32> to vector<16xf32>
    %189 = vector.shape_cast %188 : vector<16xf32> to vector<16x1xf32>
    %190 = vector.broadcast %189 : vector<16x1xf32> to vector<16x16xf32>
    %191 = arith.subf %187, %190 : vector<16x16xf32>
    %192 = math.exp %191 : vector<16x16xf32>
    %cst_84 = arith.constant dense<0.000000e+00> : vector<16xf32>
    %193 = vector.multi_reduction <add>, %192, %cst_84 [1] : vector<16x16xf32> to vector<16xf32>
    %194 = vector.shape_cast %193 : vector<16xf32> to vector<16x1xf32>
    %195 = tpu.reciprocal %194 {approx = true} : vector<16x1xf32> -> vector<16x1xf32>
    %196 = vector.broadcast %195 : vector<16x1xf32> to vector<16x16xf32>
    %197 = arith.mulf %192, %196 : vector<16x16xf32>
    %198 = arith.truncf %197 : vector<16x16xf32> to vector<16x16xbf16>
    %cst_85 = arith.constant dense<0.000000e+00> : vector<16x16xf32>
    %199 = tpu.matmul %198, %183, %cst_85 {dimension_numbers = #tpu.dot_dimension_numbers<[1], [0], [0], [1], [0, 0, 1, 1], [], []>} : vector<16x16xbf16>, vector<16x16xbf16>, vector<16x16xf32> -> vector<16x16xf32>
    %200 = vector.extract_strided_slice %175 {offsets = [0, 16], sizes = [16, 16], strides = [1, 1]} : vector<16x32xf32> to vector<16x16xf32>
    %201 = arith.truncf %200 : vector<16x16xf32> to vector<16x16xbf16>
    %202 = vector.extract_strided_slice %176 {offsets = [0, 16], sizes = [16, 16], strides = [1, 1]} : vector<16x32xf32> to vector<16x16xf32>
    %203 = arith.truncf %202 : vector<16x16xf32> to vector<16x16xbf16>
    %204 = vector.extract_strided_slice %177 {offsets = [0, 16], sizes = [16, 16], strides = [1, 1]} : vector<16x32xf32> to vector<16x16xf32>
    %205 = arith.truncf %204 : vector<16x16xf32> to vector<16x16xbf16>
    %cst_86 = arith.constant dense<0.000000e+00> : vector<16x16xf32>
    %206 = tpu.matmul %201, %203, %cst_86 {dimension_numbers = #tpu.dot_dimension_numbers<[1], [1], [0], [0], [0, 0, 1, 0], [], []>} : vector<16x16xbf16>, vector<16x16xbf16>, vector<16x16xf32> -> vector<16x16xf32>
    %cst_87 = arith.constant 2.500000e-01 : f32
    %207 = vector.broadcast %cst_87 : f32 to vector<16x16xf32>
    %208 = arith.mulf %206, %207 : vector<16x16xf32>
    %209 = arith.addf %208, %23 : vector<16x16xf32>
    %cst_88 = arith.constant dense<0xFF800000> : vector<16xf32>
    %210 = vector.multi_reduction <maximumf>, %209, %cst_88 [1] : vector<16x16xf32> to vector<16xf32>
    %211 = vector.shape_cast %210 : vector<16xf32> to vector<16x1xf32>
    %212 = vector.broadcast %211 : vector<16x1xf32> to vector<16x16xf32>
    %213 = arith.subf %209, %212 : vector<16x16xf32>
    %214 = math.exp %213 : vector<16x16xf32>
    %cst_89 = arith.constant dense<0.000000e+00> : vector<16xf32>
    %215 = vector.multi_reduction <add>, %214, %cst_89 [1] : vector<16x16xf32> to vector<16xf32>
    %216 = vector.shape_cast %215 : vector<16xf32> to vector<16x1xf32>
    %217 = tpu.reciprocal %216 {approx = true} : vector<16x1xf32> -> vector<16x1xf32>
    %218 = vector.broadcast %217 : vector<16x1xf32> to vector<16x16xf32>
    %219 = arith.mulf %214, %218 : vector<16x16xf32>
    %220 = arith.truncf %219 : vector<16x16xf32> to vector<16x16xbf16>
    %cst_90 = arith.constant dense<0.000000e+00> : vector<16x16xf32>
    %221 = tpu.matmul %220, %205, %cst_90 {dimension_numbers = #tpu.dot_dimension_numbers<[1], [0], [0], [1], [0, 0, 1, 1], [], []>} : vector<16x16xbf16>, vector<16x16xbf16>, vector<16x16xf32> -> vector<16x16xf32>
    %222 = tpu.concatenate %199, %221 in 1 : vector<16x16xf32>, vector<16x16xf32> -> vector<16x32xf32>
    %c1_91 = arith.constant 1 : index
    %c0_92 = arith.constant 0 : index
    %c0_93 = arith.constant 0 : index
    %223 = vector.load %arg7[%c1_91, %c0_92, %c0_93] : memref<2x32x32xbf16, #tpu.memory_space<vmem>>, vector<1x32x32xbf16>
    %224 = vector.shape_cast %223 : vector<1x32x32xbf16> to vector<32x32xbf16>
    %c1_94 = arith.constant 1 : index
    %c0_95 = arith.constant 0 : index
    %c0_96 = arith.constant 0 : index
    %225 = vector.load %arg8[%c1_94, %c0_95, %c0_96] : memref<2x1x32xf32, #tpu.memory_space<vmem>>, vector<1x1x32xf32>
    %226 = vector.shape_cast %225 : vector<1x1x32xf32> to vector<1x32xf32>
    %227 = arith.truncf %222 : vector<16x32xf32> to vector<16x32xbf16>
    %cst_97 = arith.constant dense<0.000000e+00> : vector<16x32xf32>
    %228 = tpu.matmul %227, %224, %cst_97 {dimension_numbers = #tpu.dot_dimension_numbers<[1], [0], [0], [1], [0, 0, 1, 1], [], []>} : vector<16x32xbf16>, vector<32x32xbf16>, vector<16x32xf32> -> vector<16x32xf32>
    %229 = vector.broadcast %226 : vector<1x32xf32> to vector<16x32xf32>
    %230 = arith.addf %228, %229 : vector<16x32xf32>
    %231 = arith.addf %230, %166 : vector<16x32xf32>
    %c1_98 = arith.constant 1 : index
    %c0_99 = arith.constant 0 : index
    %c0_100 = arith.constant 0 : index
    %232 = vector.load %arg9[%c1_98, %c0_99, %c0_100] : memref<2x1x32xf32, #tpu.memory_space<vmem>>, vector<1x1x32xf32>
    %233 = vector.shape_cast %232 : vector<1x1x32xf32> to vector<1x32xf32>
    %c1_101 = arith.constant 1 : index
    %c0_102 = arith.constant 0 : index
    %c0_103 = arith.constant 0 : index
    %234 = vector.load %arg10[%c1_101, %c0_102, %c0_103] : memref<2x1x32xf32, #tpu.memory_space<vmem>>, vector<1x1x32xf32>
    %235 = vector.shape_cast %234 : vector<1x1x32xf32> to vector<1x32xf32>
    %cst_104 = arith.constant dense<0.000000e+00> : vector<16xf32>
    %236 = vector.multi_reduction <add>, %231, %cst_104 [1] : vector<16x32xf32> to vector<16xf32>
    %237 = vector.shape_cast %236 : vector<16xf32> to vector<16x1xf32>
    %cst_105 = arith.constant 3.200000e+01 : f32
    %238 = vector.broadcast %cst_105 : f32 to vector<16x1xf32>
    %239 = arith.divf %237, %238 : vector<16x1xf32>
    %240 = vector.broadcast %239 : vector<16x1xf32> to vector<16x32xf32>
    %241 = arith.subf %231, %240 : vector<16x32xf32>
    %242 = arith.mulf %241, %241 : vector<16x32xf32>
    %cst_106 = arith.constant dense<0.000000e+00> : vector<16xf32>
    %243 = vector.multi_reduction <add>, %242, %cst_106 [1] : vector<16x32xf32> to vector<16xf32>
    %244 = vector.shape_cast %243 : vector<16xf32> to vector<16x1xf32>
    %cst_107 = arith.constant 3.200000e+01 : f32
    %245 = vector.broadcast %cst_107 : f32 to vector<16x1xf32>
    %246 = arith.divf %244, %245 : vector<16x1xf32>
    %cst_108 = arith.constant 9.99999974E-6 : f32
    %247 = vector.broadcast %cst_108 : f32 to vector<16x1xf32>
    %248 = arith.addf %246, %247 : vector<16x1xf32>
    %249 = math.rsqrt %248 : vector<16x1xf32>
    %250 = vector.broadcast %249 : vector<16x1xf32> to vector<16x32xf32>
    %251 = arith.mulf %241, %250 : vector<16x32xf32>
    %252 = vector.broadcast %233 : vector<1x32xf32> to vector<16x32xf32>
    %253 = arith.mulf %251, %252 : vector<16x32xf32>
    %254 = vector.broadcast %235 : vector<1x32xf32> to vector<16x32xf32>
    %255 = arith.addf %253, %254 : vector<16x32xf32>
    %c1_109 = arith.constant 1 : index
    %c0_110 = arith.constant 0 : index
    %c0_111 = arith.constant 0 : index
    %256 = vector.load %arg11[%c1_109, %c0_110, %c0_111] : memref<2x32x64xbf16, #tpu.memory_space<vmem>>, vector<1x32x64xbf16>
    %257 = vector.shape_cast %256 : vector<1x32x64xbf16> to vector<32x64xbf16>
    %c1_112 = arith.constant 1 : index
    %c0_113 = arith.constant 0 : index
    %c0_114 = arith.constant 0 : index
    %258 = vector.load %arg12[%c1_112, %c0_113, %c0_114] : memref<2x1x64xf32, #tpu.memory_space<vmem>>, vector<1x1x64xf32>
    %259 = vector.shape_cast %258 : vector<1x1x64xf32> to vector<1x64xf32>
    %260 = arith.truncf %255 : vector<16x32xf32> to vector<16x32xbf16>
    %cst_115 = arith.constant dense<0.000000e+00> : vector<16x64xf32>
    %261 = tpu.matmul %260, %257, %cst_115 {dimension_numbers = #tpu.dot_dimension_numbers<[1], [0], [0], [1], [0, 0, 1, 1], [], []>} : vector<16x32xbf16>, vector<32x64xbf16>, vector<16x64xf32> -> vector<16x64xf32>
    %262 = vector.broadcast %259 : vector<1x64xf32> to vector<16x64xf32>
    %263 = arith.addf %261, %262 : vector<16x64xf32>
    %264 = arith.mulf %263, %263 : vector<16x64xf32>
    %265 = arith.mulf %263, %264 : vector<16x64xf32>
    %cst_116 = arith.constant 4.471500e-02 : f32
    %266 = vector.broadcast %cst_116 : f32 to vector<16x64xf32>
    %267 = arith.mulf %266, %265 : vector<16x64xf32>
    %268 = arith.addf %263, %267 : vector<16x64xf32>
    %cst_117 = arith.constant 0.797884583 : f32
    %269 = vector.broadcast %cst_117 : f32 to vector<16x64xf32>
    %270 = arith.mulf %269, %268 : vector<16x64xf32>
    %271 = math.tanh %270 : vector<16x64xf32>
    %cst_118 = arith.constant 1.000000e+00 : f32
    %272 = vector.broadcast %cst_118 : f32 to vector<16x64xf32>
    %273 = arith.addf %272, %271 : vector<16x64xf32>
    %cst_119 = arith.constant 5.000000e-01 : f32
    %274 = vector.broadcast %cst_119 : f32 to vector<16x64xf32>
    %275 = arith.mulf %274, %273 : vector<16x64xf32>
    %276 = arith.mulf %263, %275 : vector<16x64xf32>
    %c1_120 = arith.constant 1 : index
    %c0_121 = arith.constant 0 : index
    %c0_122 = arith.constant 0 : index
    %277 = vector.load %arg13[%c1_120, %c0_121, %c0_122] : memref<2x64x32xbf16, #tpu.memory_space<vmem>>, vector<1x64x32xbf16>
    %278 = vector.shape_cast %277 : vector<1x64x32xbf16> to vector<64x32xbf16>
    %c1_123 = arith.constant 1 : index
    %c0_124 = arith.constant 0 : index
    %c0_125 = arith.constant 0 : index
    %279 = vector.load %arg14[%c1_123, %c0_124, %c0_125] : memref<2x1x32xf32, #tpu.memory_space<vmem>>, vector<1x1x32xf32>
    %280 = vector.shape_cast %279 : vector<1x1x32xf32> to vector<1x32xf32>
    %281 = arith.truncf %276 : vector<16x64xf32> to vector<16x64xbf16>
    %cst_126 = arith.constant dense<0.000000e+00> : vector<16x32xf32>
    %282 = tpu.matmul %281, %278, %cst_126 {dimension_numbers = #tpu.dot_dimension_numbers<[1], [0], [0], [1], [0, 0, 1, 1], [], []>} : vector<16x64xbf16>, vector<64x32xbf16>, vector<16x32xf32> -> vector<16x32xf32>
    %283 = vector.broadcast %280 : vector<1x32xf32> to vector<16x32xf32>
    %284 = arith.addf %282, %283 : vector<16x32xf32>
    %285 = arith.addf %284, %255 : vector<16x32xf32>
    %c1_127 = arith.constant 1 : index
    %c0_128 = arith.constant 0 : index
    %c0_129 = arith.constant 0 : index
    %286 = vector.load %arg15[%c1_127, %c0_128, %c0_129] : memref<2x1x32xf32, #tpu.memory_space<vmem>>, vector<1x1x32xf32>
    %287 = vector.shape_cast %286 : vector<1x1x32xf32> to vector<1x32xf32>
    %c1_130 = arith.constant 1 : index
    %c0_131 = arith.constant 0 : index
    %c0_132 = arith.constant 0 : index
    %288 = vector.load %arg16[%c1_130, %c0_131, %c0_132] : memref<2x1x32xf32, #tpu.memory_space<vmem>>, vector<1x1x32xf32>
    %289 = vector.shape_cast %288 : vector<1x1x32xf32> to vector<1x32xf32>
    %cst_133 = arith.constant dense<0.000000e+00> : vector<16xf32>
    %290 = vector.multi_reduction <add>, %285, %cst_133 [1] : vector<16x32xf32> to vector<16xf32>
    %291 = vector.shape_cast %290 : vector<16xf32> to vector<16x1xf32>
    %cst_134 = arith.constant 3.200000e+01 : f32
    %292 = vector.broadcast %cst_134 : f32 to vector<16x1xf32>
    %293 = arith.divf %291, %292 : vector<16x1xf32>
    %294 = vector.broadcast %293 : vector<16x1xf32> to vector<16x32xf32>
    %295 = arith.subf %285, %294 : vector<16x32xf32>
    %296 = arith.mulf %295, %295 : vector<16x32xf32>
    %cst_135 = arith.constant dense<0.000000e+00> : vector<16xf32>
    %297 = vector.multi_reduction <add>, %296, %cst_135 [1] : vector<16x32xf32> to vector<16xf32>
    %298 = vector.shape_cast %297 : vector<16xf32> to vector<16x1xf32>
    %cst_136 = arith.constant 3.200000e+01 : f32
    %299 = vector.broadcast %cst_136 : f32 to vector<16x1xf32>
    %300 = arith.divf %298, %299 : vector<16x1xf32>
    %cst_137 = arith.constant 9.99999974E-6 : f32
    %301 = vector.broadcast %cst_137 : f32 to vector<16x1xf32>
    %302 = arith.addf %300, %301 : vector<16x1xf32>
    %303 = math.rsqrt %302 : vector<16x1xf32>
    %304 = vector.broadcast %303 : vector<16x1xf32> to vector<16x32xf32>
    %305 = arith.mulf %295, %304 : vector<16x32xf32>
    %306 = vector.broadcast %287 : vector<1x32xf32> to vector<16x32xf32>
    %307 = arith.mulf %305, %306 : vector<16x32xf32>
    %308 = vector.broadcast %289 : vector<1x32xf32> to vector<16x32xf32>
    %309 = arith.addf %307, %308 : vector<16x32xf32>
    %c0_138 = arith.constant 0 : index
    %c0_139 = arith.constant 0 : index
    %310 = vector.load %arg17[%c0_138, %c0_139] : memref<16x32xf32, #tpu.memory_space<vmem>>, vector<16x32xf32>
    tpu.vector_store %arg17[%c0_138, %c0_139], %309 {strides = array<i32>} : memref<16x32xf32, #tpu.memory_space<vmem>>, vector<16x32xf32>,
    return
  }
  func.func @transform_0(%arg0: i32) -> (i32, i32) {
    %c0_i32 = arith.constant 0 : i32
    %c0_i32_0 = arith.constant 0 : i32
    %c0_i32_1 = arith.constant 0 : i32
    return %c0_i32, %c0_i32_0 : i32, i32
  }
  func.func @transform_1(%arg0: i32) -> (i32, i32) {
    %c0_i32 = arith.constant 0 : i32
    %c0_i32_0 = arith.constant 0 : i32
    %c0_i32_1 = arith.constant 0 : i32
    return %c0_i32, %c0_i32_0 : i32, i32
  }
  func.func @transform_2(%arg0: i32) -> (i32, i32) {
    %c0_i32 = arith.constant 0 : i32
    %c0_i32_0 = arith.constant 0 : i32
    %c0_i32_1 = arith.constant 0 : i32
    return %c0_i32, %c0_i32_0 : i32, i32
  }
  func.func @transform_3(%arg0: i32) -> (i32, i32) {
    %c0_i32 = arith.constant 0 : i32
    %c0_i32_0 = arith.constant 0 : i32
    %c0_i32_1 = arith.constant 0 : i32
    return %c0_i32, %c0_i32_0 : i32, i32
  }
  func.func @transform_4(%arg0: i32) -> (i32, i32, i32) {
    %c0_i32 = arith.constant 0 : i32
    %c0_i32_0 = arith.constant 0 : i32
    %c0_i32_1 = arith.constant 0 : i32
    %c0_i32_2 = arith.constant 0 : i32
    return %c0_i32, %c0_i32_0, %c0_i32_1 : i32, i32, i32
  }
  func.func @transform_5(%arg0: i32) -> (i32, i32, i32) {
    %c0_i32 = arith.constant 0 : i32
    %c0_i32_0 = arith.constant 0 : i32
    %c0_i32_1 = arith.constant 0 : i32
    %c0_i32_2 = arith.constant 0 : i32
    return %c0_i32, %c0_i32_0, %c0_i32_1 : i32, i32, i32
  }
  func.func @transform_6(%arg0: i32) -> (i32, i32, i32) {
    %c0_i32 = arith.constant 0 : i32
    %c0_i32_0 = arith.constant 0 : i32
    %c0_i32_1 = arith.constant 0 : i32
    %c0_i32_2 = arith.constant 0 : i32
    return %c0_i32, %c0_i32_0, %c0_i32_1 : i32, i32, i32
  }
  func.func @transform_7(%arg0: i32) -> (i32, i32, i32) {
    %c0_i32 = arith.constant 0 : i32
    %c0_i32_0 = arith.constant 0 : i32
    %c0_i32_1 = arith.constant 0 : i32
    %c0_i32_2 = arith.constant 0 : i32
    return %c0_i32, %c0_i32_0, %c0_i32_1 : i32, i32, i32
  }
  func.func @transform_8(%arg0: i32) -> (i32, i32, i32) {
    %c0_i32 = arith.constant 0 : i32
    %c0_i32_0 = arith.constant 0 : i32
    %c0_i32_1 = arith.constant 0 : i32
    %c0_i32_2 = arith.constant 0 : i32
    return %c0_i32, %c0_i32_0, %c0_i32_1 : i32, i32, i32
  }
  func.func @transform_9(%arg0: i32) -> (i32, i32, i32) {
    %c0_i32 = arith.constant 0 : i32
    %c0_i32_0 = arith.constant 0 : i32
    %c0_i32_1 = arith.constant 0 : i32
    %c0_i32_2 = arith.constant 0 : i32
    return %c0_i32, %c0_i32_0, %c0_i32_1 : i32, i32, i32
  }
  func.func @transform_10(%arg0: i32) -> (i32, i32, i32) {
    %c0_i32 = arith.constant 0 : i32
    %c0_i32_0 = arith.constant 0 : i32
    %c0_i32_1 = arith.constant 0 : i32
    %c0_i32_2 = arith.constant 0 : i32
    return %c0_i32, %c0_i32_0, %c0_i32_1 : i32, i32, i32
  }
  func.func @transform_11(%arg0: i32) -> (i32, i32, i32) {
    %c0_i32 = arith.constant 0 : i32
    %c0_i32_0 = arith.constant 0 : i32
    %c0_i32_1 = arith.constant 0 : i32
    %c0_i32_2 = arith.constant 0 : i32
    return %c0_i32, %c0_i32_0, %c0_i32_1 : i32, i32, i32
  }
  func.func @transform_12(%arg0: i32) -> (i32, i32, i32) {
    %c0_i32 = arith.constant 0 : i32
    %c0_i32_0 = arith.constant 0 : i32
    %c0_i32_1 = arith.constant 0 : i32
    %c0_i32_2 = arith.constant 0 : i32
    return %c0_i32, %c0_i32_0, %c0_i32_1 : i32, i32, i32
  }
  func.func @transform_13(%arg0: i32) -> (i32, i32, i32) {
    %c0_i32 = arith.constant 0 : i32
    %c0_i32_0 = arith.constant 0 : i32
    %c0_i32_1 = arith.constant 0 : i32
    %c0_i32_2 = arith.constant 0 : i32
    return %c0_i32, %c0_i32_0, %c0_i32_1 : i32, i32, i32
  }
  func.func @transform_14(%arg0: i32) -> (i32, i32, i32) {
    %c0_i32 = arith.constant 0 : i32
    %c0_i32_0 = arith.constant 0 : i32
    %c0_i32_1 = arith.constant 0 : i32
    %c0_i32_2 = arith.constant 0 : i32
    return %c0_i32, %c0_i32_0, %c0_i32_1 : i32, i32, i32
  }
  func.func @transform_15(%arg0: i32) -> (i32, i32, i32) {
    %c0_i32 = arith.constant 0 : i32
    %c0_i32_0 = arith.constant 0 : i32
    %c0_i32_1 = arith.constant 0 : i32
    %c0_i32_2 = arith.constant 0 : i32
    return %c0_i32, %c0_i32_0, %c0_i32_1 : i32, i32, i32
  }
  func.func @transform_16(%arg0: i32) -> (i32, i32) {
    %c0_i32 = arith.constant 0 : i32
    %c0_i32_0 = arith.constant 0 : i32
    %c0_i32_1 = arith.constant 0 : i32
    return %c0_i32, %c0_i32_0 : i32, i32
  }
}

</mosaic_0001>

<bundles_post_ra>
// kernel: mul.10
= control target key start
LH: loop header
LB: loop body
LE: loop exit
PB: predicated region body
PF: predicated region fallthrough
CT: control target
= control target key end

     0   :  { %vm7_vm0 = vcmask 64512   ;;  %vm13_vm1 = vcmask 130112   ;;  %s39_s0 = inlined_call_operand.vmem [shape: f32[2,8], index: 0, kind: input, shape index: {}]   ;;  %s40_s1 = inlined_call_operand.vmem [shape: f32[16], index: 1, kind: output, shape index: {}]  }
   0x1   :  { %v4_v0 = vld [vmem:[%s39_s0] sm:$0x3]  ;;  %s22_s0 = smov 8  }
   0x2   :  { %5 = vst [vmem:[#allocation1] sm:$0x3] %v4_v0 }
   0x9   :  { %v10_v1 = vld [vmem:[#allocation1 + $0x1] sm:$0x1]   ;;  %v6_v2 = vld [vmem:[#allocation1] sm:$0x1]  }
   0xa   :  { %11 = vrot.lane.b32.xlu0 %v10_v1, %s22_s0  ;;  %8 = vst.msk [vmem:[#allocation0] sm:$0x1] %vm7_vm0, %v6_v2  }
  0x7c   :  { %v12_v3 = vpop.permute.xlu0 %11  }
  0x7d   :  { %14 = vst.msk [vmem:[#allocation0] sm:$0x1] %vm13_vm1, %v12_v3  }
  0x84   :  { %v18_v4 = vld [vmem:[#allocation0] sm:$0x1] }
  0x85   :  { %20 = vst [vmem:[%s40_s1] sm:$0x1] %v18_v4 }

// kernel: music_encoder_forward.1
= control target key start
LH: loop header
LB: loop body
LE: loop exit
PB: predicated region body
PF: predicated region fallthrough
CT: control target
= control target key end

     0   :  { %s2236_s0 = inlined_call_operand.vmem [shape: f32[16,32], index: 0, kind: input, shape index: {}]   ;;  %s2237_s1 = inlined_call_operand.vmem [shape: f32[16,16], index: 1, kind: input, shape index: {}]   ;;  %s2238_s2 = inlined_call_operand.vmem [shape: f32[1,32], index: 2, kind: input, shape index: {}]   ;;  %s2239_s3 = inlined_call_operand.vmem [shape: f32[1,32], index: 3, kind: input, shape index: {}]   ;;  %s2240_s4 = inlined_call_operand.vmem [shape: bf16[2,32,96], index: 4, kind: input, shape index: {}]   ;;  %s2241_s5 = inlined_call_operand.vmem [shape: f32[2,1,96], index: 5, kind: input, shape index: {}]   ;;  %s2242_s6 = inlined_call_operand.vmem [shape: bf16[2,32,32], index: 6, kind: input, shape index: {}]   ;;  %s2243_s7 = inlined_call_operand.vmem [shape: f32[2,1,32], index: 7, kind: input, shape index: {}]   ;;  %s2244_s8 = inlined_call_operand.vmem [shape: f32[2,1,32], index: 8, kind: input, shape index: {}]   ;;  %s2245_s9 = inlined_call_operand.vmem [shape: f32[2,1,32], index: 9, kind: input, shape index: {}]   ;;  %s2246_s10 = inlined_call_operand.vmem [shape: bf16[2,32,64], index: 10, kind: input, shape index: {}]   ;;  %s2247_s11 = inlined_call_operand.vmem [shape: f32[2,1,64], index: 11, kind: input, shape index: {}]   ;;  %s2248_s12 = inlined_call_operand.vmem [shape: bf16[2,64,32], index: 12, kind: input, shape index: {}]   ;;  %s2249_s13 = inlined_call_operand.vmem [shape: f32[2,1,32], index: 13, kind: input, shape index: {}]   ;;  %s2250_s14 = inlined_call_operand.vmem [shape: f32[2,1,32], index: 14, kind: input, shape index: {}]   ;;  %s2251_s15 = inlined_call_operand.vmem [shape: f32[2,1,32], index: 15, kind: input, shape index: {}]   ;;  %s2252_s16 = inlined_call_operand.hbm [shape: f32[16,32], index: 16, kind: output, shape index: {}]  }
   0x1   :  { %2254 = sst [smem:[#allocation5_spill]] %s2236_s0 }
   0x2   :  { %s2255_s23 = sld [smem:[#allocation5_spill]]  ;;  %vm59_vm0 = vcmask 261120  }
   0x8   :  { %v55_v0 = vld [vmem:[%s2255_s23] sm:$0xff]  ;;  %v56_v1 = vld [vmem:[%s2255_s23 + $0x8] sm:$0xff] }
   0x9   :  { %v60_v2 = vsel %vm59_vm0, %v55_v0, 0.0  ;;  %v63_v3 = vsel %vm59_vm0, %v56_v1, 0.0 }
   0xa   :  { %61 = vadd.xlane.f32.xlu0 %v60_v2 }
   0xe   :  { %64 = vadd.xlane.f32.xlu0 %v63_v3 }
   0xf   :  { %21 = vsyncpa [#allocation3], 0  ;;  %v1720_v14 = vld [vmem:[%s2240_s4] sm:$0xff]   ;;  %v1824_v15 = vmov 0.0   ;;  %v1721_v16 = vld [vmem:[%s2240_s4 + $0x8] sm:$0xff]   ;;  %vm1825_vm1 = vmmov 0  }
  0x10   :  { %1579 = vmatprep.subr.bf16.mxu1 %v1824_v15  ;;  %1593 = vmatprep.subr.bf16.mxu0 %v1824_v15  ;;  %v1453_v25 = vld [vmem:[%s2238_s2] ss:$0 sm:$0xff]  ;;  %s1827_s20 = smov 96   ;;  %s1828_s21 = smov 112   ;;  %vm177_vm2 = vcmask 130048   ;;  %v1989_v52 = vld [vmem:[%s2237_s1 + $0x8] sm:$0xff] }
  0x11   :  { %1580 = vmatpush3.bf16.msra.mxu1 %v1720_v14  ;;  %1583 = vmatprep.mubr.msk.bf16.mxu1 %vm1825_vm1, %v1824_v15  ;;  %v1454_v29 = vld [vmem:[%s2239_s3] ss:$0 sm:$0xff]  ;;  %s1826_s3 = smov 80   ;;  %s1830_s26 = smov 48   ;;  %vm674_vm3 = vcmask 523264  }
  0x12   :  { %1581 = vmatprep.subr.bf16.mxu1 %v1824_v15  ;;  %1595 = vmatprep.mubr.msk.bf16.mxu0 %vm1825_vm1, %v1824_v15  ;;  %v1455_v34 = vld [vmem:[%s2241_s5] ss:$0 sm:$0xff]  ;;  %s1831_s0 = smov 16  }
  0x13   :  { %v1984_v48 = vld [vmem:[%s2237_s1] sm:$0xff]  ;;  %s1829_s1 = smov 64  }
  0x15   :  { %1582 = vmatpush3.bf16.msra.mxu1 %v1721_v16 }
  0x16   :  { %1587 = vmatprep.subr.bf16.mxu1 %v1824_v15 }
  0x97   :  { %v62_v4 = vpop.xlane.xlu0 %61 }
  0x98   :  { %v67_v5 = vmul.f32 0.03125, %v62_v4 }
  0x9a   :  { %v69_v6 = vsub.f32 %v55_v0, %v67_v5 }
  0x9b   :  { %v65_v7 = vpop.xlane.xlu0 %64 }
  0x9c   :  { %v68_v8 = vmul.f32 0.03125, %v65_v7  ;;  %v71_v9 = vmul.f32 %v69_v6, %v69_v6 }
  0x9e   :  { %v70_v10 = vsub.f32 %v56_v1, %v68_v8  ;;  %v73_v11 = vsel %vm59_vm0, %v71_v9, 0.0 }
  0x9f   :  { %74 = vadd.xlane.f32.xlu1 %v73_v11 }
  0xa0   :  { %v72_v12 = vmul.f32 %v70_v10, %v70_v10 }
  0xa2   :  { %v76_v13 = vsel %vm59_vm0, %v72_v12, 0.0 }
  0xa3   :  { %77 = vadd.xlane.f32.xlu1 %v76_v13 }
 0x12c   :  { %v75_v17 = vpop.xlane.xlu1 %74 }
 0x12d   :  { %v79_v18 = vmul.f32 0.03125, %v75_v17 }
 0x12f   :  { %v81_v19 = vadd.f32 1e-05, %v79_v18 }
 0x130   :  { %v78_v20 = vpop.xlane.xlu1 %77 }
 0x131   :  { %1740 = vrsqrt.f32 %v81_v19  ;;  %v80_v21 = vmul.f32 0.03125, %v78_v20 }
 0x133   :  { %v82_v22 = vadd.f32 1e-05, %v80_v21 }
 0x135   :  { %1742 = vrsqrt.f32 %v82_v22 }
 0x13b   :  { %v1741_v23 = vpop.eup %1740 }
 0x13c   :  { %v85_v24 = vmul.f32 %v1741_v23, %v69_v6 }
 0x13e   :  { %v93_v28 = vmul.f32 %v1453_v25, %v85_v24 }
 0x13f   :  { %v1743_v26 = vpop.eup %1742 }
 0x140   :  { %v86_v27 = vmul.f32 %v1743_v26, %v70_v10  ;;  %v1950_v31 = vadd.f32 %v1454_v29, %v93_v28 }
 0x142   :  { %v94_v30 = vmul.f32 %v1453_v25, %v86_v27 }
 0x144   :  { %v1952_v32 = vadd.f32 %v1454_v29, %v94_v30 }
 0x146   :  { %v110_v33 = vpack.c.bf16 %v1952_v32, %v1950_v31 }
 0x148   :  { %1584 = vmatmul.mubr.msk.bf16.vlgmr.msra.gmra.mrb[0].mxu1 %vm59_vm0, %v110_v33 }
 0x149   :  { %1589 = vmatprep.mubr.msk.bf16.mxu1 %vm1825_vm1, %v1824_v15 }
 0x21b   :  { %v166_v35 = vpop.f32.mrb[0].mxu1 }
 0x21c   :  { %v1585_v36 = vpop.f32.mrb[1].mxu1  ;;  %v167_v38 = vadd.f32 %v1455_v34, %v166_v35 }
 0x21d   :  { %v169_v37 = vpop.f32.mrb[2].mxu1 }
 0x21e   :  { %v170_v39 = vadd.f32 %v1455_v34, %v169_v37  ;;  %v1586_v40 = vpop.f32.mrb[3].mxu1 }
 0x220   :  { %v1962_v41 = vpack.c.bf16 %v170_v39, %v167_v38 }
 0x222   :  { %301 = vrot.lane.b32.xlu1 %v1962_v41, %s1826_s3  ;;  %175 = vrot.lane.b32.xlu0 %v1962_v41, %s1827_s20 }
 0x226   :  { %299 = vrot.lane.b32.xlu1 %v1962_v41, %s1828_s21 }
 0x294   :  { %v176_v42 = vpop.permute.xlu0 %175  ;;  %v302_v44 = vpop.permute.xlu1 %301 }
 0x295   :  { %v182_v43 = vsel %vm177_vm2, %v176_v42, 0  ;;  %v307_v45 = vsel %vm177_vm2, %v302_v44, 0  ;;  %v1722_v44 = vld [vmem:[%s2242_s6] sm:$0xff]  }
 0x296   :  { %1588 = vmatpush3.bf16.xpose.msra.mxu1 %v182_v43 }
 0x297   :  { %1599 = vmatprep.subr.bf16.mxu1 %v1824_v15 }
 0x298   :  { %v300_v46 = vpop.permute.xlu1 %299 }
 0x29d   :  { %1590 = vmatmul.mubr.msk.bf16.vlgmr.msra.gmra.mrb[4].mxu1 %vm177_vm2, %v1962_v41 }
 0x29e   :  { %1600 = vmatpush3.bf16.xpose.msra.mxu1 %v307_v45  ;;  %1601 = vmatprep.mubr.msk.bf16.mxu1 %vm1825_vm1, %v1824_v15 }
 0x29f   :  { %1611 = vmatprep.subr.bf16.mxu1 %v1824_v15 }
 0x2a5   :  { %1602 = vmatmul.mubr.msk.bf16.vlgmr.msra.gmra.mrb[8].mxu1 %vm177_vm2, %v300_v46 }
 0x2a6   :  { %1615 = vmatprep.mubr.msk.bf16.mxu1 %vm1825_vm1, %v1824_v15  ;;  %1612 = vmatpush3.bf16.msra.mxu1 %v1722_v44  ;;  %v1469_v44 = vld [vmem:[%s2247_s11] ss:$0 sm:$0xff] }
 0x2a7   :  { %1613 = vmatprep.subr.bf16.mxu1 %v1824_v15 }
 0x370   :  { %v218_v47 = vpop.f32.mrb[4].mxu1 }
 0x371   :  { %v225_v49 = vmul.f32 0.25, %v218_v47  ;;  %v1591_v50 = vpop.f32.mrb[5].mxu1 }
 0x372   :  { %v221_v51 = vpop.f32.mrb[6].mxu1  ;;  %v1723_v50 = vld [vmem:[%s2242_s6 + $0x8] sm:$0xff]  }
 0x373   :  { %v226_v53 = vmul.f32 0.25, %v221_v51  ;;  %v1592_v54 = vpop.f32.mrb[7].mxu1  ;;  %v227_v55 = vadd.f32 %v225_v49, %v1984_v48  ;;  %1614 = vmatpush3.bf16.msra.mxu1 %v1723_v50 }
 0x374   :  { %1627 = vmatprep.subr.bf16.mxu1 %v1824_v15 }
 0x375   :  { %v229_v56 = vsel %vm177_vm2, %v227_v55, -inf  ;;  %v228_v57 = vadd.f32 %v226_v53, %v1989_v52 }
 0x376   :  { %230 = vmax.xlane.f32.xlu1 %v229_v56 }
 0x377   :  { %v232_v58 = vsel %vm177_vm2, %v228_v57, -inf }
 0x378   :  { %233 = vmax.xlane.f32.xlu0 %v232_v58  ;;  %v343_v59 = vpop.f32.mrb[8].mxu1 }
 0x379   :  { %v350_v60 = vmul.f32 0.25, %v343_v59  ;;  %v1603_v61 = vpop.f32.mrb[9].mxu1 }
 0x37a   :  { %v346_v62 = vpop.f32.mrb[10].mxu1 }
 0x37b   :  { %v351_v63 = vmul.f32 0.25, %v346_v62  ;;  %v1604_v0 = vpop.f32.mrb[11].mxu1  ;;  %v352_v1 = vadd.f32 %v350_v60, %v1984_v48 }
 0x37d   :  { %v354_v2 = vsel %vm177_vm2, %v352_v1, -inf  ;;  %v353_v3 = vadd.f32 %v351_v63, %v1989_v52  ;;  %v1463_v63 = vld [vmem:[%s2243_s7] ss:$0 sm:$0xff] }
 0x37e   :  { %355 = vmax.xlane.f32.xlu0 %v354_v2 }
 0x37f   :  { %v357_v4 = vsel %vm177_vm2, %v353_v3, -inf }
 0x382   :  { %358 = vmax.xlane.f32.xlu0 %v357_v4 }
 0x403   :  { %v231_v5 = vpop.xlane.xlu1 %230 }
 0x404   :  { %v235_v6 = vsub.f32 %v227_v55, %v231_v5 }
 0x405   :  { %v234_v7 = vpop.xlane.xlu0 %233 }
 0x406   :  { %v237_v8 = vmul.f32 1.442695, %v235_v6  ;;  %v236_v9 = vsub.f32 %v228_v57, %v234_v7 }
 0x408   :  { %1744 = vpow2.f32 %v237_v8  ;;  %v239_v10 = vmul.f32 1.442695, %v236_v9 }
 0x40a   :  { %1746 = vpow2.f32 %v239_v10 }
 0x40b   :  { %v356_v11 = vpop.xlane.xlu0 %355 }
 0x40c   :  { %v360_v12 = vsub.f32 %v352_v1, %v356_v11 }
 0x40e   :  { %v362_v13 = vmul.f32 1.442695, %v360_v12 }
 0x40f   :  { %v359_v14 = vpop.xlane.xlu0 %358 }
 0x410   :  { %1748 = vpow2.f32 %v362_v13  ;;  %v361_v16 = vsub.f32 %v353_v3, %v359_v14 }
 0x412   :  { %v1745_v17 = vpop.eup %1744  ;;  %v364_v18 = vmul.f32 1.442695, %v361_v16 }
 0x413   :  { %v241_v19 = vsel %vm177_vm2, %v1745_v17, 0.0 }
 0x414   :  { %v1747_v20 = vpop.eup %1746  ;;  %1750 = vpow2.f32 %v364_v18  ;;  %242 = vadd.xlane.f32.xlu1 %v241_v19 }
 0x415   :  { %v244_v21 = vsel %vm177_vm2, %v1747_v20, 0.0 }
 0x416   :  { %245 = vadd.xlane.f32.xlu0 %v244_v21 }
 0x41a   :  { %v1749_v22 = vpop.eup %1748 }
 0x41b   :  { %v366_v23 = vsel %vm177_vm2, %v1749_v22, 0.0 }
 0x41c   :  { %367 = vadd.xlane.f32.xlu1 %v366_v23 }
 0x41e   :  { %v1751_v24 = vpop.eup %1750 }
 0x41f   :  { %v369_v25 = vsel %vm177_vm2, %v1751_v24, 0.0 }
 0x420   :  { %370 = vadd.xlane.f32.xlu0 %v369_v25 }
 0x42d   :  { %252 = vrot.lane.b32.xlu1 %v1962_v41, %s1829_s1 }
 0x436   :  { %377 = vrot.lane.b32.xlu0 %v1962_v41, %s1830_s26 }
 0x4a1   :  { %v243_v26 = vpop.xlane.xlu1 %242 }
 0x4a2   :  { %1752 = vrcp.f32 %v243_v26 }
 0x4a3   :  { %v246_v27 = vpop.xlane.xlu0 %245 }
 0x4a4   :  { %1754 = vrcp.f32 %v246_v27 }
 0x4a9   :  { %v368_v28 = vpop.xlane.xlu1 %367 }
 0x4aa   :  { %1756 = vrcp.f32 %v368_v28  ;;  %v1467_v28 = vld [vmem:[%s2244_s8] ss:$0 sm:$0xff] }
 0x4ac   :  { %v1753_v29 = vpop.eup %1752 }
 0x4ad   :  { %v253_v30 = vpop.permute.xlu1 %252  ;;  %v371_v33 = vpop.xlane.xlu0 %370  ;;  %v249_v35 = vmul.f32 %v1753_v29, %v1745_v17 }
 0x4ae   :  { %v1755_v34 = vpop.eup %1754  ;;  %1758 = vrcp.f32 %v371_v33  ;;  %1594 = vmatpush3.bf16.msra.mxu0 %v253_v30 }
 0x4af   :  { %1605 = vmatprep.subr.bf16.mxu0 %v1824_v15  ;;  %v250_v36 = vmul.f32 %v1755_v34, %v1747_v20  ;;  %v1725_v20 = vld [vmem:[%s2246_s10 + $0x8] sm:$0xff]  }
 0x4b1   :  { %v378_v37 = vpop.permute.xlu0 %377  ;;  %v251_v38 = vpack.c.bf16 %v250_v36, %v249_v35  ;;  %v1468_v35 = vld [vmem:[%s2245_s9] ss:$0 sm:$0xff] }
 0x4b3   :  { %1596 = vmatmul.mubr.msk.bf16.vlgmr.msra.gmra.mrb[0].mxu0 %vm177_vm2, %v251_v38 }
 0x4b4   :  { %1606 = vmatpush3.bf16.msra.mxu0 %v378_v37  ;;  %1607 = vmatprep.mubr.msk.bf16.mxu0 %vm1825_vm1, %v1824_v15  ;;  %v1757_v39 = vpop.eup %1756 }
 0x4b5   :  { %1619 = vmatprep.subr.bf16.mxu0 %v1824_v15  ;;  %v374_v41 = vmul.f32 %v1757_v39, %v1749_v22 }
 0x4b8   :  { %v1759_v40 = vpop.eup %1758 }
 0x4b9   :  { %v375_v42 = vmul.f32 %v1759_v40, %v1751_v24  ;;  %v1726_v40 = vld [vmem:[%s2248_s12] sm:$0xff]  }
 0x4bb   :  { %v376_v43 = vpack.c.bf16 %v375_v42, %v374_v41  ;;  %v1727_v41 = vld [vmem:[%s2248_s12 + $0x8] sm:$0xff]   ;;  %v1728_v42 = vld [vmem:[%s2248_s12 + $0x10] sm:$0xff]  }
 0x4bd   :  { %1608 = vmatmul.mubr.msk.bf16.vlgmr.msra.gmra.mrb[4].mxu0 %vm177_vm2, %v376_v43  ;;  %v1729_v43 = vld [vmem:[%s2248_s12 + $0x18] sm:$0xff]  }
 0x4be   :  { %1623 = vmatprep.mubr.msk.bf16.mxu0 %vm1825_vm1, %v1824_v15 }
 0x586   :  { %v292_v45 = vpop.f32.mrb[0].mxu0 }
 0x587   :  { %v1597_v46 = vpop.f32.mrb[1].mxu0 }
 0x588   :  { %v295_v47 = vpop.f32.mrb[2].mxu0 }
 0x589   :  { %v1598_v49 = vpop.f32.mrb[3].mxu0 }
 0x590   :  { %v417_v51 = vpop.f32.mrb[4].mxu0 }
 0x591   :  { %v1609_v53 = vpop.f32.mrb[5].mxu0 }
 0x592   :  { %v420_v54 = vpop.f32.mrb[6].mxu0 }
 0x593   :  { %v1710_v55 = vpack.i.bf16 %v420_v54, %v417_v51  ;;  %v1610_v56 = vpop.f32.mrb[7].mxu0 }
 0x595   :  { %1711 = vrot.lane.b32.xlu1 %v1710_v55, %s1831_s0 }
 0x607   :  { %v1712_v57 = vpop.permute.xlu1 %1711 }
 0x608   :  { %v1714_v58 = vunpack.i.h.bf16 %v1712_v57  ;;  %v1713_v59 = vunpack.i.l.bf16 %v1712_v57 }
 0x60a   :  { %v433_v60 = vsel %vm177_vm2, %v295_v47, %v1714_v58  ;;  %v432_v61 = vsel %vm177_vm2, %v292_v45, %v1713_v59 }
 0x60b   :  { %v439_v62 = vpack.c.bf16 %v433_v60, %v432_v61 }
 0x60d   :  { %1616 = vmatmul.mubr.msk.bf16.vlgmr.msra.gmra.mrb[12].mxu1 %vm59_vm0, %v439_v62 }
 0x60e   :  { %1635 = vmatprep.mubr.msk.bf16.mxu1 %vm1825_vm1, %v1824_v15  ;;  %1628 = vmatpush3.bf16.msra.mxu1 %v1726_v40 }
 0x60f   :  { %1629 = vmatprep.subr.bf16.mxu1 %v1824_v15 }
 0x612   :  { %1630 = vmatpush3.bf16.msra.mxu1 %v1727_v41 }
 0x613   :  { %1631 = vmatprep.subr.bf16.mxu1 %v1824_v15 }
 0x616   :  { %1632 = vmatpush3.bf16.msra.mxu1 %v1728_v42 }
 0x617   :  { %1633 = vmatprep.subr.bf16.mxu1 %v1824_v15 }
 0x61a   :  { %1634 = vmatpush3.bf16.msra.mxu1 %v1729_v43 }
 0x61b   :  { %1653 = vmatprep.subr.bf16.mxu1 %v1824_v15 }
 0x6e0   :  { %v495_v0 = vpop.f32.mrb[12].mxu1 }
 0x6e1   :  { %v496_v1 = vadd.f32 %v1463_v63, %v495_v0  ;;  %v1617_v2 = vpop.f32.mrb[13].mxu1 }
 0x6e2   :  { %v498_v3 = vpop.f32.mrb[14].mxu1 }
 0x6e3   :  { %v499_v4 = vadd.f32 %v1463_v63, %v498_v3  ;;  %v1618_v5 = vpop.f32.mrb[15].mxu1  ;;  %v502_v6 = vadd.f32 %v496_v1, %v1950_v31 }
 0x6e5   :  { %v506_v7 = vsel %vm59_vm0, %v502_v6, 0.0  ;;  %v503_v8 = vadd.f32 %v499_v4, %v1952_v32  ;;  %v1724_v32 = vld [vmem:[%s2246_s10] sm:$0xff]  }
 0x6e6   :  { %507 = vadd.xlane.f32.xlu1 %v506_v7  ;;  %1620 = vmatpush3.bf16.msra.mxu0 %v1724_v32 }
 0x6e7   :  { %v509_v9 = vsel %vm59_vm0, %v503_v8, 0.0  ;;  %1621 = vmatprep.subr.bf16.mxu0 %v1824_v15 }
 0x6e8   :  { %510 = vadd.xlane.f32.xlu0 %v509_v9 }
 0x6ea   :  { %1622 = vmatpush3.bf16.msra.mxu0 %v1725_v20 }
 0x6eb   :  { %1639 = vmatprep.subr.bf16.mxu0 %v1824_v15 }
 0x773   :  { %v508_v10 = vpop.xlane.xlu1 %507 }
 0x774   :  { %v512_v11 = vmul.f32 0.03125, %v508_v10 }
 0x775   :  { %v511_v12 = vpop.xlane.xlu0 %510 }
 0x776   :  { %v514_v13 = vsub.f32 %v502_v6, %v512_v11  ;;  %v513_v14 = vmul.f32 0.03125, %v511_v12 }
 0x778   :  { %v515_v16 = vsub.f32 %v503_v8, %v513_v14  ;;  %v516_v17 = vmul.f32 %v514_v13, %v514_v13  ;;  %v1473_v8 = vld [vmem:[%s2249_s13] ss:$0 sm:$0xff] }
 0x77a   :  { %v518_v18 = vsel %vm59_vm0, %v516_v17, 0.0  ;;  %v517_v19 = vmul.f32 %v515_v16, %v515_v16 }
 0x77b   :  { %519 = vadd.xlane.f32.xlu0 %v518_v18 }
 0x77c   :  { %v521_v31 = vsel %vm59_vm0, %v517_v19, 0.0 }
 0x77d   :  { %522 = vadd.xlane.f32.xlu1 %v521_v31 }
 0x808   :  { %v520_v21 = vpop.xlane.xlu0 %519 }
 0x809   :  { %v524_v22 = vmul.f32 0.03125, %v520_v21 }
 0x80a   :  { %v523_v23 = vpop.xlane.xlu1 %522 }
 0x80b   :  { %v526_v24 = vadd.f32 1e-05, %v524_v22  ;;  %v525_v25 = vmul.f32 0.03125, %v523_v23 }
 0x80d   :  { %1760 = vrsqrt.f32 %v526_v24  ;;  %v527_v26 = vadd.f32 1e-05, %v525_v25 }
 0x80f   :  { %1762 = vrsqrt.f32 %v527_v26 }
 0x817   :  { %v1761_v27 = vpop.eup %1760 }
 0x818   :  { %v530_v29 = vmul.f32 %v1761_v27, %v514_v13 }
 0x819   :  { %v1763_v30 = vpop.eup %1762 }
 0x81a   :  { %v538_v33 = vmul.f32 %v1467_v28, %v530_v29  ;;  %v531_v34 = vmul.f32 %v1763_v30, %v515_v16  ;;  %v1731_v29 = vld [vmem:[%s2240_s4 + $0x18] sm:$0xff]  }
 0x81c   :  { %v539_v36 = vmul.f32 %v1467_v28, %v531_v34  ;;  %v546_v37 = vadd.f32 %v1468_v35, %v538_v33  ;;  %v1730_v28 = vld [vmem:[%s2240_s4 + $0x10] sm:$0xff]  }
 0x81e   :  { %v547_v38 = vadd.f32 %v1468_v35, %v539_v36 }
 0x820   :  { %v553_v39 = vpack.c.bf16 %v547_v38, %v546_v37 }
 0x822   :  { %1624 = vmatmul.mubr.msk.bf16.vlgmr.msra.gmra.mrb[8].mxu0 %vm59_vm0, %v553_v39  ;;  %v1479_v39 = vld [vmem:[%s2250_s14] ss:$0 sm:$0xff] }
 0x823   :  { %1643 = vmatprep.mubr.msk.bf16.mxu0 %vm1825_vm1, %v1824_v15  ;;  %1640 = vmatpush3.bf16.msra.mxu0 %v1730_v28 }
 0x824   :  { %1641 = vmatprep.subr.bf16.mxu0 %v1824_v15 }
 0x827   :  { %1642 = vmatpush3.bf16.msra.mxu0 %v1731_v29 }
 0x828   :  { %1647 = vmatprep.subr.bf16.mxu0 %v1824_v15 }
 0x8f5   :  { %v609_v45 = vpop.f32.mrb[8].mxu0 }
 0x8f6   :  { %v610_v46 = vadd.f32 %v1469_v44, %v609_v45  ;;  %v1625_v47 = vpop.f32.mrb[9].mxu0 }
 0x8f7   :  { %v612_v49 = vpop.f32.mrb[10].mxu0 }
 0x8f8   :  { %v616_v50 = vmul.f32 %v610_v46, %v610_v46  ;;  %v613_v51 = vadd.f32 %v1469_v44, %v612_v49  ;;  %v1626_v53 = vpop.f32.mrb[11].mxu0  ;;  %v1480_v44 = vld [vmem:[%s2251_s15] ss:$0 sm:$0xff] }
 0x8fa   :  { %v618_v54 = vmul.f32 %v616_v50, %v610_v46  ;;  %v617_v55 = vmul.f32 %v613_v51, %v613_v51  ;;  %v1486_v50 = vld [vmem:[%s2241_s5 + $0x1] ss:$0 sm:$0xff] }
 0x8fc   :  { %v620_v56 = vmul.f32 0.044715, %v618_v54  ;;  %v619_v57 = vmul.f32 %v617_v55, %v613_v51 }
 0x8fe   :  { %v622_v58 = vadd.f32 %v620_v56, %v610_v46  ;;  %v621_v59 = vmul.f32 0.044715, %v619_v57 }
 0x900   :  { %v624_v60 = vmul.f32 0.7978846, %v622_v58  ;;  %v623_v61 = vadd.f32 %v621_v59, %v613_v51 }
 0x902   :  { %1764 = vtanh.f32 %v624_v60  ;;  %v625_v62 = vmul.f32 0.7978846, %v623_v61 }
 0x904   :  { %1766 = vtanh.f32 %v625_v62 }
 0x90c   :  { %v1765_v63 = vpop.eup %1764 }
 0x90d   :  { %v628_v0 = vadd.f32 1.0, %v1765_v63 }
 0x90e   :  { %v1767_v1 = vpop.eup %1766 }
 0x90f   :  { %v630_v2 = vmul.f32 0.5, %v628_v0  ;;  %v629_v3 = vadd.f32 1.0, %v1767_v1 }
 0x911   :  { %v631_v4 = vmul.f32 0.5, %v629_v3  ;;  %v632_v5 = vmul.f32 %v630_v2, %v610_v46 }
 0x913   :  { %v633_v6 = vmul.f32 %v631_v4, %v613_v51 }
 0x915   :  { %v643_v7 = vpack.c.bf16 %v633_v6, %v632_v5 }
 0x917   :  { %1636 = vmatmul.mubr.msk.bf16.vlgmr.msra.gmra.mrb[16].mxu1 %vm674_vm3, %v643_v7 }
 0x918   :  { %1655 = vmatprep.mubr.msk.bf16.mxu1 %vm1825_vm1, %v1824_v15 }
 0x9ea   :  { %v712_v9 = vpop.f32.mrb[16].mxu1 }
 0x9eb   :  { %v713_v10 = vadd.f32 %v1473_v8, %v712_v9  ;;  %v1637_v11 = vpop.f32.mrb[17].mxu1 }
 0x9ec   :  { %v715_v12 = vpop.f32.mrb[18].mxu1 }
 0x9ed   :  { %v716_v13 = vadd.f32 %v1473_v8, %v715_v12  ;;  %v1638_v14 = vpop.f32.mrb[19].mxu1  ;;  %v719_v16 = vadd.f32 %v713_v10, %v546_v37 }
 0x9ef   :  { %v723_v17 = vsel %vm59_vm0, %v719_v16, 0.0  ;;  %v720_v18 = vadd.f32 %v716_v13, %v547_v38 }
 0x9f0   :  { %724 = vadd.xlane.f32.xlu0 %v723_v17 }
 0x9f1   :  { %v726_v19 = vsel %vm59_vm0, %v720_v18, 0.0 }
 0x9f2   :  { %727 = vadd.xlane.f32.xlu1 %v726_v19 }
 0xa7d   :  { %v725_v31 = vpop.xlane.xlu0 %724 }
 0xa7e   :  { %v729_v32 = vmul.f32 0.03125, %v725_v31 }
 0xa7f   :  { %v728_v20 = vpop.xlane.xlu1 %727 }
 0xa80   :  { %v731_v21 = vsub.f32 %v719_v16, %v729_v32  ;;  %v730_v22 = vmul.f32 0.03125, %v728_v20 }
 0xa82   :  { %v732_v23 = vsub.f32 %v720_v18, %v730_v22  ;;  %v733_v24 = vmul.f32 %v731_v21, %v731_v21 }
 0xa84   :  { %v735_v25 = vsel %vm59_vm0, %v733_v24, 0.0  ;;  %v734_v26 = vmul.f32 %v732_v23, %v732_v23 }
 0xa85   :  { %736 = vadd.xlane.f32.xlu0 %v735_v25 }
 0xa86   :  { %v738_v27 = vsel %vm59_vm0, %v734_v26, 0.0 }
 0xa87   :  { %739 = vadd.xlane.f32.xlu1 %v738_v27 }
 0xb12   :  { %v737_v30 = vpop.xlane.xlu0 %736 }
 0xb13   :  { %v741_v33 = vmul.f32 0.03125, %v737_v30 }
 0xb14   :  { %v740_v34 = vpop.xlane.xlu1 %739 }
 0xb15   :  { %v743_v35 = vadd.f32 1e-05, %v741_v33  ;;  %v742_v36 = vmul.f32 0.03125, %v740_v34 }
 0xb17   :  { %1768 = vrsqrt.f32 %v743_v35  ;;  %v744_v37 = vadd.f32 1e-05, %v742_v36 }
 0xb19   :  { %1770 = vrsqrt.f32 %v744_v37 }
 0xb21   :  { %v1769_v38 = vpop.eup %1768 }
 0xb22   :  { %v747_v40 = vmul.f32 %v1769_v38, %v731_v21 }
 0xb23   :  { %v1771_v41 = vpop.eup %1770 }
 0xb24   :  { %v755_v42 = vmul.f32 %v1479_v39, %v747_v40  ;;  %v748_v43 = vmul.f32 %v1771_v41, %v732_v23 }
 0xb26   :  { %v756_v45 = vmul.f32 %v1479_v39, %v748_v43  ;;  %v2098_v46 = vadd.f32 %v1480_v44, %v755_v42 }
 0xb28   :  { %v2100_v47 = vadd.f32 %v1480_v44, %v756_v45 }
 0xb2a   :  { %v772_v49 = vpack.c.bf16 %v2100_v47, %v2098_v46 }
 0xb2c   :  { %1644 = vmatmul.mubr.msk.bf16.vlgmr.msra.gmra.mrb[12].mxu0 %vm59_vm0, %v772_v49 }
 0xb2d   :  { %1649 = vmatprep.mubr.msk.bf16.mxu0 %vm1825_vm1, %v1824_v15 }
 0xbff   :  { %v828_v51 = vpop.f32.mrb[12].mxu0 }
 0xc00   :  { %v1645_v53 = vpop.f32.mrb[13].mxu0  ;;  %v829_v55 = vadd.f32 %v1486_v50, %v828_v51 }
 0xc01   :  { %v831_v54 = vpop.f32.mrb[14].mxu0 }
 0xc02   :  { %v832_v56 = vadd.f32 %v1486_v50, %v831_v54  ;;  %v1646_v57 = vpop.f32.mrb[15].mxu0 }
 0xc04   :  { %v2110_v58 = vpack.c.bf16 %v832_v56, %v829_v55 }
 0xc06   :  { %962 = vrot.lane.b32.xlu1 %v2110_v58, %s1826_s3  ;;  %837 = vrot.lane.b32.xlu0 %v2110_v58, %s1827_s20  ;;  %s1832_s20 = smov [#allocation2]  }
 0xc0a   :  { %960 = vrot.lane.b32.xlu1 %v2110_v58, %s1828_s21  ;;  %s1442_s21 = sshll.u32 %s1832_s20, 4  ;;  %s1443_s21 = int_to_ptr.vmem [resolvable:$true] %s1442_s21 }
 0xc0b   :  { %p1805_p1 = scmp.lt.s32.totalorder %s1443_s21, %s1443_s21 }
 0xc78   :  { %v838_v59 = vpop.permute.xlu0 %837  ;;  %v963_v61 = vpop.permute.xlu1 %962 }
 0xc79   :  { %v843_v60 = vsel %vm177_vm2, %v838_v59, 0  ;;  %v968_v62 = vsel %vm177_vm2, %v963_v61, 0  ;;  %v1732_v59 = vld [vmem:[%s2242_s6 + $0x10] sm:$0xff]  }
 0xc7a   :  { %1648 = vmatpush3.bf16.xpose.msra.mxu0 %v843_v60 }
 0xc7b   :  { %1659 = vmatprep.subr.bf16.mxu0 %v1824_v15 }
 0xc7c   :  { %v961_v63 = vpop.permute.xlu1 %960 }
 0xc81   :  { %1650 = vmatmul.mubr.msk.bf16.vlgmr.msra.gmra.mrb[16].mxu0 %vm177_vm2, %v2110_v58 }
 0xc82   :  { %1660 = vmatpush3.bf16.xpose.msra.mxu0 %v968_v62  ;;  %1661 = vmatprep.mubr.msk.bf16.mxu0 %vm1825_vm1, %v1824_v15 }
 0xc83   :  { %1671 = vmatprep.subr.bf16.mxu0 %v1824_v15 }
 0xc89   :  { %1662 = vmatmul.mubr.msk.bf16.vlgmr.msra.gmra.mrb[20].mxu0 %vm177_vm2, %v961_v63 }
 0xc8a   :  { %1675 = vmatprep.mubr.msk.bf16.mxu0 %vm1825_vm1, %v1824_v15  ;;  %1672 = vmatpush3.bf16.msra.mxu0 %v1732_v59 }
 0xc8b   :  { %1673 = vmatprep.subr.bf16.mxu0 %v1824_v15 }
 0xd54   :  { %v879_v0 = vpop.f32.mrb[16].mxu0 }
 0xd55   :  { %v886_v1 = vmul.f32 0.25, %v879_v0  ;;  %v1651_v2 = vpop.f32.mrb[17].mxu0  ;;  %v1733_v0 = vld [vmem:[%s2242_s6 + $0x18] sm:$0xff]   ;;  %s1800_s6 = scalar_lea.vmem %s1443_s21, 256 }
 0xd56   :  { %v882_v3 = vpop.f32.mrb[18].mxu0  ;;  %1674 = vmatpush3.bf16.msra.mxu0 %v1733_v0  ;;  %p1801_p0 = scmp.ne.s32.totalorder %s1443_s21, %s1800_s6  ;;  %p1806_p2 = scmp.lt.s32.totalorder %s1800_s6, %s1800_s6 }
 0xd57   :  { %v887_v4 = vmul.f32 0.25, %v882_v3  ;;  %v1652_v5 = vpop.f32.mrb[19].mxu0  ;;  %v888_v6 = vadd.f32 %v886_v1, %v1984_v48  ;;  %1687 = vmatprep.subr.bf16.mxu0 %v1824_v15 }
 0xd58   :  { %p1807_p3 = por %p1806_p2, %p1805_p1 }
 0xd59   :  { %v890_v7 = vsel %vm177_vm2, %v888_v6, -inf  ;;  %v889_v8 = vadd.f32 %v887_v4, %v1989_v52 }
 0xd5a   :  { %891 = vmax.xlane.f32.xlu1 %v890_v7  ;;  %p1808_p4 = pnand %p1807_p3, %p1801_p0 }
 0xd5b   :  { %v893_v9 = vsel %vm177_vm2, %v889_v8, -inf }
 0xd5c   :  { %894 = vmax.xlane.f32.xlu0 %v893_v9  ;;  %v1004_v10 = vpop.f32.mrb[20].mxu0 }
 0xd5d   :  { %v1011_v11 = vmul.f32 0.25, %v1004_v10  ;;  %v1663_v12 = vpop.f32.mrb[21].mxu0 }
 0xd5e   :  { %v1007_v13 = vpop.f32.mrb[22].mxu0  ;;  %v1499_v12 = vld [vmem:[%s2243_s7 + $0x1] ss:$0 sm:$0xff] }
 0xd5f   :  { %v1012_v14 = vmul.f32 0.25, %v1007_v13  ;;  %v1664_v16 = vpop.f32.mrb[23].mxu0  ;;  %v1013_v17 = vadd.f32 %v1011_v11, %v1984_v48 }
 0xd61   :  { %v1015_v18 = vsel %vm177_vm2, %v1013_v17, -inf  ;;  %v1014_v19 = vadd.f32 %v1012_v14, %v1989_v52 }
 0xd62   :  { %1016 = vmax.xlane.f32.xlu0 %v1015_v18 }
 0xd63   :  { %v1018_v31 = vsel %vm177_vm2, %v1014_v19, -inf }
 0xd66   :  { %1019 = vmax.xlane.f32.xlu0 %v1018_v31 }
 0xde7   :  { %v892_v32 = vpop.xlane.xlu1 %891 }
 0xde8   :  { %v896_v20 = vsub.f32 %v888_v6, %v892_v32 }
 0xde9   :  { %v895_v21 = vpop.xlane.xlu0 %894 }
 0xdea   :  { %v898_v22 = vmul.f32 1.442695, %v896_v20  ;;  %v897_v23 = vsub.f32 %v889_v8, %v895_v21 }
 0xdec   :  { %1772 = vpow2.f32 %v898_v22  ;;  %v900_v24 = vmul.f32 1.442695, %v897_v23 }
 0xdee   :  { %1774 = vpow2.f32 %v900_v24 }
 0xdef   :  { %v1017_v25 = vpop.xlane.xlu0 %1016 }
 0xdf0   :  { %v1021_v26 = vsub.f32 %v1013_v17, %v1017_v25 }
 0xdf2   :  { %v1023_v27 = vmul.f32 1.442695, %v1021_v26 }
 0xdf3   :  { %v1020_v48 = vpop.xlane.xlu0 %1019 }
 0xdf4   :  { %1776 = vpow2.f32 %v1023_v27  ;;  %v1022_v28 = vsub.f32 %v1014_v19, %v1020_v48 }
 0xdf6   :  { %v1773_v29 = vpop.eup %1772  ;;  %v1025_v52 = vmul.f32 1.442695, %v1022_v28 }
 0xdf7   :  { %v902_v30 = vsel %vm177_vm2, %v1773_v29, 0.0 }
 0xdf8   :  { %v1775_v33 = vpop.eup %1774  ;;  %1778 = vpow2.f32 %v1025_v52  ;;  %903 = vadd.xlane.f32.xlu1 %v902_v30  ;;  %v1735_v52 = vld [vmem:[%s2246_s10 + $0x18] sm:$0xff]  }
 0xdf9   :  { %v905_v34 = vsel %vm177_vm2, %v1775_v33, 0.0 }
 0xdfa   :  { %906 = vadd.xlane.f32.xlu0 %v905_v34 }
 0xdfe   :  { %v1777_v35 = vpop.eup %1776 }
 0xdff   :  { %v1027_v36 = vsel %vm177_vm2, %v1777_v35, 0.0 }
 0xe00   :  { %1028 = vadd.xlane.f32.xlu1 %v1027_v36 }
 0xe02   :  { %v1779_v37 = vpop.eup %1778 }
 0xe03   :  { %v1030_v38 = vsel %vm177_vm2, %v1779_v37, 0.0 }
 0xe04   :  { %1031 = vadd.xlane.f32.xlu0 %v1030_v38 }
 0xe11   :  { %913 = vrot.lane.b32.xlu1 %v2110_v58, %s1829_s1 }
 0xe1a   :  { %1038 = vrot.lane.b32.xlu0 %v2110_v58, %s1830_s26 }
 0xe85   :  { %v904_v39 = vpop.xlane.xlu1 %903 }
 0xe86   :  { %1780 = vrcp.f32 %v904_v39  ;;  %v1505_v39 = vld [vmem:[%s2244_s8 + $0x1] ss:$0 sm:$0xff] }
 0xe87   :  { %v907_v40 = vpop.xlane.xlu0 %906 }
 0xe88   :  { %1782 = vrcp.f32 %v907_v40 }
 0xe8d   :  { %v1029_v41 = vpop.xlane.xlu1 %1028 }
 0xe8e   :  { %1784 = vrcp.f32 %v1029_v41 }
 0xe90   :  { %v1781_v42 = vpop.eup %1780 }
 0xe91   :  { %v914_v43 = vpop.permute.xlu1 %913  ;;  %v1032_v44 = vpop.xlane.xlu0 %1031  ;;  %v910_v49 = vmul.f32 %v1781_v42, %v1773_v29 }
 0xe92   :  { %v1783_v45 = vpop.eup %1782  ;;  %1786 = vrcp.f32 %v1032_v44  ;;  %1654 = vmatpush3.bf16.msra.mxu1 %v914_v43  ;;  %v1506_v44 = vld [vmem:[%s2245_s9 + $0x1] ss:$0 sm:$0xff] }
 0xe93   :  { %v911_v50 = vmul.f32 %v1783_v45, %v1775_v33  ;;  %1665 = vmatprep.subr.bf16.mxu1 %v1824_v15 }
 0xe95   :  { %v1039_v51 = vpop.permute.xlu0 %1038  ;;  %v912_v53 = vpack.c.bf16 %v911_v50, %v910_v49 }
 0xe97   :  { %1656 = vmatmul.mubr.msk.bf16.vlgmr.msra.gmra.mrb[20].mxu1 %vm177_vm2, %v912_v53  ;;  %v1736_v53 = vld [vmem:[%s2248_s12 + $0x20] sm:$0xff]  }
 0xe98   :  { %1666 = vmatpush3.bf16.msra.mxu1 %v1039_v51  ;;  %1667 = vmatprep.mubr.msk.bf16.mxu1 %vm1825_vm1, %v1824_v15  ;;  %v1785_v54 = vpop.eup %1784 }
 0xe99   :  { %1679 = vmatprep.subr.bf16.mxu1 %v1824_v15  ;;  %v1035_v56 = vmul.f32 %v1785_v54, %v1777_v35  ;;  %v1737_v54 = vld [vmem:[%s2248_s12 + $0x28] sm:$0xff]  }
 0xe9c   :  { %v1787_v55 = vpop.eup %1786 }
 0xe9d   :  { %v1036_v57 = vmul.f32 %v1787_v55, %v1779_v37  ;;  %v1738_v55 = vld [vmem:[%s2248_s12 + $0x30] sm:$0xff]  }
 0xe9f   :  { %v1037_v58 = vpack.c.bf16 %v1036_v57, %v1035_v56  ;;  %v1739_v56 = vld [vmem:[%s2248_s12 + $0x38] sm:$0xff]   ;;  %v1512_v57 = vld [vmem:[%s2247_s11 + $0x1] ss:$0 sm:$0xff] }
 0xea1   :  { %1668 = vmatmul.mubr.msk.bf16.vlgmr.msra.gmra.mrb[24].mxu1 %vm177_vm2, %v1037_v58 }
 0xea2   :  { %1683 = vmatprep.mubr.msk.bf16.mxu1 %vm1825_vm1, %v1824_v15 }
 0xf6a   :  { %v953_v60 = vpop.f32.mrb[20].mxu1 }
 0xf6b   :  { %v1657_v61 = vpop.f32.mrb[21].mxu1 }
 0xf6c   :  { %v956_v62 = vpop.f32.mrb[22].mxu1 }
 0xf6d   :  { %v1658_v63 = vpop.f32.mrb[23].mxu1 }
 0xf74   :  { %v1078_v1 = vpop.f32.mrb[24].mxu1 }
 0xf75   :  { %v1669_v2 = vpop.f32.mrb[25].mxu1 }
 0xf76   :  { %v1081_v3 = vpop.f32.mrb[26].mxu1 }
 0xf77   :  { %v1715_v4 = vpack.i.bf16 %v1081_v3, %v1078_v1  ;;  %v1670_v5 = vpop.f32.mrb[27].mxu1 }
 0xf79   :  { %1716 = vrot.lane.b32.xlu1 %v1715_v4, %s1831_s0 }
 0xfeb   :  { %v1717_v6 = vpop.permute.xlu1 %1716 }
 0xfec   :  { %v1719_v7 = vunpack.i.h.bf16 %v1717_v6  ;;  %v1718_v8 = vunpack.i.l.bf16 %v1717_v6 }
 0xfee   :  { %v1094_v9 = vsel %vm177_vm2, %v956_v62, %v1719_v7  ;;  %v1093_v10 = vsel %vm177_vm2, %v953_v60, %v1718_v8 }
 0xfef   :  { %v1102_v11 = vpack.c.bf16 %v1094_v9, %v1093_v10 }
 0xff1   :  { %1676 = vmatmul.mubr.msk.bf16.vlgmr.msra.gmra.mrb[24].mxu0 %vm59_vm0, %v1102_v11 }
 0xff2   :  { %1695 = vmatprep.mubr.msk.bf16.mxu0 %vm1825_vm1, %v1824_v15  ;;  %1688 = vmatpush3.bf16.msra.mxu0 %v1736_v53 }
 0xff3   :  { %1689 = vmatprep.subr.bf16.mxu0 %v1824_v15 }
 0xff6   :  { %1690 = vmatpush3.bf16.msra.mxu0 %v1737_v54 }
 0xff7   :  { %1691 = vmatprep.subr.bf16.mxu0 %v1824_v15 }
 0xffa   :  { %1692 = vmatpush3.bf16.msra.mxu0 %v1738_v55 }
 0xffb   :  { %1693 = vmatprep.subr.bf16.mxu0 %v1824_v15 }
 0xffe   :  { %1694 = vmatpush3.bf16.msra.mxu0 %v1739_v56 }
0x10c4   :  { %v1158_v13 = vpop.f32.mrb[24].mxu0 }
0x10c5   :  { %v1159_v14 = vadd.f32 %v1499_v12, %v1158_v13  ;;  %v1677_v16 = vpop.f32.mrb[25].mxu0 }
0x10c6   :  { %v1161_v17 = vpop.f32.mrb[26].mxu0 }
0x10c7   :  { %v1162_v18 = vadd.f32 %v1499_v12, %v1161_v17  ;;  %v1678_v19 = vpop.f32.mrb[27].mxu0  ;;  %v1165_v31 = vadd.f32 %v1159_v14, %v2098_v46 }
0x10c8   :  { %v1525_v19 = vld [vmem:[%s2249_s13 + $0x1] ss:$0 sm:$0xff] }
0x10c9   :  { %v1171_v32 = vsel %vm59_vm0, %v1165_v31, 0.0  ;;  %v1166_v20 = vadd.f32 %v1162_v18, %v2100_v47  ;;  %v1734_v47 = vld [vmem:[%s2246_s10 + $0x10] sm:$0xff]  }
0x10ca   :  { %1172 = vadd.xlane.f32.xlu1 %v1171_v32  ;;  %1680 = vmatpush3.bf16.msra.mxu1 %v1734_v47 }
0x10cb   :  { %v1174_v21 = vsel %vm59_vm0, %v1166_v20, 0.0  ;;  %1681 = vmatprep.subr.bf16.mxu1 %v1824_v15 }
0x10cc   :  { %1175 = vadd.xlane.f32.xlu0 %v1174_v21 }
0x10ce   :  { %1682 = vmatpush3.bf16.msra.mxu1 %v1735_v52 }
0x1157   :  { %v1173_v22 = vpop.xlane.xlu1 %1172 }
0x1158   :  { %v1177_v23 = vmul.f32 0.03125, %v1173_v22 }
0x1159   :  { %v1176_v24 = vpop.xlane.xlu0 %1175 }
0x115a   :  { %v1179_v25 = vsub.f32 %v1165_v31, %v1177_v23  ;;  %v1178_v26 = vmul.f32 0.03125, %v1176_v24 }
0x115c   :  { %v1180_v27 = vsub.f32 %v1166_v20, %v1178_v26  ;;  %v1181_v48 = vmul.f32 %v1179_v25, %v1179_v25 }
0x115e   :  { %v1183_v28 = vsel %vm59_vm0, %v1181_v48, 0.0  ;;  %v1182_v29 = vmul.f32 %v1180_v27, %v1180_v27 }
0x115f   :  { %1184 = vadd.xlane.f32.xlu0 %v1183_v28 }
0x1160   :  { %v1186_v46 = vsel %vm59_vm0, %v1182_v29, 0.0 }
0x1161   :  { %1187 = vadd.xlane.f32.xlu1 %v1186_v46 }
0x11ec   :  { %v1185_v30 = vpop.xlane.xlu0 %1184 }
0x11ed   :  { %v1189_v33 = vmul.f32 0.03125, %v1185_v30 }
0x11ee   :  { %v1188_v34 = vpop.xlane.xlu1 %1187 }
0x11ef   :  { %v1191_v35 = vadd.f32 1e-05, %v1189_v33  ;;  %v1190_v36 = vmul.f32 0.03125, %v1188_v34 }
0x11f1   :  { %1788 = vrsqrt.f32 %v1191_v35  ;;  %v1192_v37 = vadd.f32 1e-05, %v1190_v36 }
0x11f3   :  { %1790 = vrsqrt.f32 %v1192_v37 }
0x11fb   :  { %v1789_v38 = vpop.eup %1788 }
0x11fc   :  { %v1195_v40 = vmul.f32 %v1789_v38, %v1179_v25 }
0x11fd   :  { %v1791_v41 = vpop.eup %1790 }
0x11fe   :  { %v1203_v42 = vmul.f32 %v1505_v39, %v1195_v40  ;;  %v1196_v43 = vmul.f32 %v1791_v41, %v1180_v27 }
0x1200   :  { %v1204_v45 = vmul.f32 %v1505_v39, %v1196_v43  ;;  %v1211_v49 = vadd.f32 %v1506_v44, %v1203_v42  ;;  %v1533_v43 = vld [vmem:[%s2250_s14 + $0x1] ss:$0 sm:$0xff] }
0x1202   :  { %v1212_v50 = vadd.f32 %v1506_v44, %v1204_v45 }
0x1204   :  { %v1220_v51 = vpack.c.bf16 %v1212_v50, %v1211_v49 }
0x1206   :  { %1684 = vmatmul.mubr.msk.bf16.vlgmr.msra.gmra.mrb[28].mxu1 %vm59_vm0, %v1220_v51 }
0x12d9   :  { %v1276_v58 = vpop.f32.mrb[28].mxu1 }
0x12da   :  { %v1277_v59 = vadd.f32 %v1512_v57, %v1276_v58  ;;  %v1685_v60 = vpop.f32.mrb[29].mxu1 }
0x12db   :  { %v1279_v61 = vpop.f32.mrb[30].mxu1 }
0x12dc   :  { %v1283_v62 = vmul.f32 %v1277_v59, %v1277_v59  ;;  %v1280_v63 = vadd.f32 %v1512_v57, %v1279_v61  ;;  %v1686_v0 = vpop.f32.mrb[31].mxu1 }
0x12de   :  { %v1285_v1 = vmul.f32 %v1283_v62, %v1277_v59  ;;  %v1284_v2 = vmul.f32 %v1280_v63, %v1280_v63 }
0x12e0   :  { %v1287_v3 = vmul.f32 0.044715, %v1285_v1  ;;  %v1286_v15 = vmul.f32 %v1284_v2, %v1280_v63 }
0x12e2   :  { %v1289_v4 = vadd.f32 %v1287_v3, %v1277_v59  ;;  %v1288_v5 = vmul.f32 0.044715, %v1286_v15 }
0x12e4   :  { %v1291_v6 = vmul.f32 0.7978846, %v1289_v4  ;;  %v1290_v7 = vadd.f32 %v1288_v5, %v1280_v63 }
0x12e6   :  { %1792 = vtanh.f32 %v1291_v6  ;;  %v1292_v8 = vmul.f32 0.7978846, %v1290_v7 }
0x12e8   :  { %1794 = vtanh.f32 %v1292_v8 }
0x12f0   :  { %v1793_v9 = vpop.eup %1792 }
0x12f1   :  { %v1295_v10 = vadd.f32 1.0, %v1793_v9 }
0x12f2   :  { %v1795_v11 = vpop.eup %1794 }
0x12f3   :  { %v1297_v12 = vmul.f32 0.5, %v1295_v10  ;;  %v1296_v13 = vadd.f32 1.0, %v1795_v11 }
0x12f5   :  { %v1298_v14 = vmul.f32 0.5, %v1296_v13  ;;  %v1299_v16 = vmul.f32 %v1297_v12, %v1277_v59 }
0x12f7   :  { %v1300_v17 = vmul.f32 %v1298_v14, %v1280_v63 }
0x12f9   :  { %v1312_v18 = vpack.c.bf16 %v1300_v17, %v1299_v16 }
0x12fb   :  { %1696 = vmatmul.mubr.msk.bf16.vlgmr.msra.gmra.mrb[28].mxu0 %vm674_vm3, %v1312_v18 }
0x13ce   :  { %v1380_v31 = vpop.f32.mrb[28].mxu0 }
0x13cf   :  { %v1381_v32 = vadd.f32 %v1525_v19, %v1380_v31  ;;  %v1697_v20 = vpop.f32.mrb[29].mxu0 }
0x13d0   :  { %v1383_v21 = vpop.f32.mrb[30].mxu0 }
0x13d1   :  { %v1384_v22 = vadd.f32 %v1525_v19, %v1383_v21  ;;  %v1698_v23 = vpop.f32.mrb[31].mxu0  ;;  %v1387_v24 = vadd.f32 %v1381_v32, %v1211_v49  ;;  %v1534_v49 = vld [vmem:[%s2251_s15 + $0x1] ss:$0 sm:$0xff] }
0x13d3   :  { %v1393_v25 = vsel %vm59_vm0, %v1387_v24, 0.0  ;;  %v1388_v26 = vadd.f32 %v1384_v22, %v1212_v50 }
0x13d4   :  { %1394 = vadd.xlane.f32.xlu0 %v1393_v25 }
0x13d5   :  { %v1396_v27 = vsel %vm59_vm0, %v1388_v26, 0.0 }
0x13d6   :  { %1397 = vadd.xlane.f32.xlu1 %v1396_v27 }
0x1461   :  { %v1395_v48 = vpop.xlane.xlu0 %1394 }
0x1462   :  { %v1399_v28 = vmul.f32 0.03125, %v1395_v48 }
0x1463   :  { %v1398_v29 = vpop.xlane.xlu1 %1397 }
0x1464   :  { %v1401_v46 = vsub.f32 %v1387_v24, %v1399_v28  ;;  %v1400_v47 = vmul.f32 0.03125, %v1398_v29 }
0x1466   :  { %v1402_v52 = vsub.f32 %v1388_v26, %v1400_v47  ;;  %v1403_v30 = vmul.f32 %v1401_v46, %v1401_v46 }
0x1468   :  { %v1405_v33 = vsel %vm59_vm0, %v1403_v30, 0.0  ;;  %v1404_v34 = vmul.f32 %v1402_v52, %v1402_v52 }
0x1469   :  { %1406 = vadd.xlane.f32.xlu0 %v1405_v33 }
0x146a   :  { %v1408_v35 = vsel %vm59_vm0, %v1404_v34, 0.0 }
0x146b   :  { %1409 = vadd.xlane.f32.xlu1 %v1408_v35 }
0x14f6   :  { %v1407_v36 = vpop.xlane.xlu0 %1406 }
0x14f7   :  { %v1411_v37 = vmul.f32 0.03125, %v1407_v36 }
0x14f8   :  { %v1410_v38 = vpop.xlane.xlu1 %1409 }
0x14f9   :  { %v1413_v39 = vadd.f32 1e-05, %v1411_v37  ;;  %v1412_v40 = vmul.f32 0.03125, %v1410_v38 }
0x14fb   :  { %1796 = vrsqrt.f32 %v1413_v39  ;;  %v1414_v41 = vadd.f32 1e-05, %v1412_v40 }
0x14fd   :  { %1798 = vrsqrt.f32 %v1414_v41 }
0x1505   :  { %v1797_v42 = vpop.eup %1796 }
0x1506   :  { %v1417_v44 = vmul.f32 %v1797_v42, %v1401_v46 }
0x1507   :  { %v1799_v45 = vpop.eup %1798 }
0x1508   :  { %v1418_v50 = vmul.f32 %v1799_v45, %v1402_v52  ;;  %v1425_v51 = vmul.f32 %v1533_v43, %v1417_v44 }
0x150a   :  { %v1426_v53 = vmul.f32 %v1533_v43, %v1418_v50  ;;  %v1433_v54 = vadd.f32 %v1534_v49, %v1425_v51 }
0x150c   :  { %v1434_v55 = vadd.f32 %v1534_v49, %v1426_v53  ;;  %1435 = vst.msk [vmem:[#allocation2] sm:$0xff] %vm59_vm0, %v1433_v54 }
0x150e   :  { %1436 = vst.msk [vmem:[#allocation2 + $0x8] sm:$0xff] %vm59_vm0, %v1434_v55 }
0x150f   :  { %1811 = shalt.err (!%p1808_p4)
}
0x1510   :  { %s1812_s1 = scalar_lea.hbm %s2252_s16, 256 }
0x1511   :  { %p1813_p5 = scmp.ne.s32.totalorder %s2252_s16, %s1812_s1  ;;  %p1816_p6 = scmp.lt.u32.totalorder %s1812_s1, %s2252_s16 }
0x1513   :  { %p1818_p7 = pnand %p1816_p6, %p1813_p5 }
0x1515   :  { %1821 = shalt.err (!%p1818_p7)
}
0x1516   :  { %s1833_s27 = smov 128   ;;  %s1834_s28 = smov 8  }
0x1517   :  { %1448 = dma.vmem_to_hbm [thread:$0]  %s1443_s21, 256, %s2252_s16, [#allocation3], %s1833_s27, %s1833_s27, %s1834_s28  }
0x1518   :  { %1822 = dma.done.wait [#allocation3], 256  }
0x1519   :  { %1823 = vsyncadd [#allocation3], 4294967040 }
0x151a   :  { %1452 = vsyncpa [#allocation3], 1 }

</bundles_post_ra>
